<compile_context>
chip_gen: v7x
topology: tpu7x:2x2x1
jax: 0.10.0
libtpu: 0.0.40
codegen_flags: <defaults>
</compile_context>

<pallas_src>
import jax
import jax.numpy as jnp
from jax.experimental import pallas as pl
from jax.experimental.pallas import tpu as pltpu

INP_SIZE = 784   # 28 * 28, as implied by xb.reshape(-1, 784)
PAD_SIZE = 896   # 7 * 128 — lane-aligned padding of the feature dim
TM_MAX = 256     # max batch tile (multiple of 256 for the v6e/v7x 2x256x256 MXU)


def linear_kernel(x_ref, wt_ref, b_ref, o_ref):
    # x_ref:  (tm, 896)   bf16 batch tile
    # wt_ref: (896, 896)  bf16 pre-transposed, zero-padded weight (== W^T padded)
    # b_ref:  (1, 896)    f32 zero-padded bias
    # o_ref:  (tm, 896)   f32 output tile (lane-dense stores)
    acc = jnp.dot(x_ref[...], wt_ref[...], preferred_element_type=jnp.float32)
    o_ref[...] = (acc + b_ref[...]).astype(o_ref.dtype)


def prepare_params(weight, bias):
    """One-time prep: transpose, zero-pad 784->896, cast weight to bf16."""
    pad = PAD_SIZE - INP_SIZE
    wt = jnp.pad(weight.T, ((0, pad), (0, pad))).astype(jnp.bfloat16)   # (896, 896)
    b = jnp.pad(bias, (0, pad)).reshape(1, PAD_SIZE).astype(jnp.float32)
    return wt, b


@jax.jit
def mnist_model_forward(xb, wt_pad, b_pad):
    """Forward of MnistModel: reshape(-1, 784) then nn.Linear(784, 784)."""
    x2d = xb.reshape(-1, INP_SIZE)
    B = x2d.shape[0]

    # Batch tile: 256 when the batch is big enough, otherwise round the (tiny)
    # batch up to the 8-sublane granule and use a single tile.
    tm = min(TM_MAX, ((B + 7) // 8) * 8)
    Bp = pl.cdiv(B, tm) * tm

    # Cast to bf16 and pad sublane/lane dims (small, fused by XLA into one pass).
    x = jnp.pad(x2d.astype(jnp.bfloat16),
                ((0, Bp - B), (0, PAD_SIZE - INP_SIZE)))

    out = pl.pallas_call(
        linear_kernel,
        out_shape=jax.ShapeDtypeStruct((Bp, PAD_SIZE), jnp.float32),
        grid=(Bp // tm,),
        in_specs=[
            pl.BlockSpec((tm, PAD_SIZE), lambda i: (i, 0)),           # stream x tiles
            pl.BlockSpec((PAD_SIZE, PAD_SIZE), lambda i: (0, 0)),     # W^T stays VMEM-resident
            pl.BlockSpec((1, PAD_SIZE), lambda i: (0, 0)),            # bias resident
        ],
        out_specs=pl.BlockSpec((tm, PAD_SIZE), lambda i: (i, 0)),
        compiler_params=pltpu.CompilerParams(
            dimension_semantics=("parallel",)),                       # shard batch across TCs (v7x)
    )(x, wt_pad, b_pad)

    return out[:B, :INP_SIZE]


def init_params(key):
    # Deterministic init mimicking nn.Linear's uniform(-1/sqrt(fan_in), 1/sqrt(fan_in)).
    kw, kb = jax.random.split(key)
    bound = 1.0 / jnp.sqrt(jnp.float32(INP_SIZE))
    weight = jax.random.uniform(kw, (INP_SIZE, INP_SIZE), jnp.float32,
                                minval=-bound, maxval=bound)
    bias = jax.random.uniform(kb, (INP_SIZE,), jnp.float32,
                              minval=-bound, maxval=bound)
    return weight, bias


if __name__ == "__main__":
    key = jax.random.PRNGKey(0)
    k_x, k_p = jax.random.split(key)

    # Small MNIST-like batch: (B=2, C=1, H=28, W=28) NCHW, matching reshape(-1, 784).
    xb = jax.random.normal(k_x, (2, 1, 28, 28), dtype=jnp.float32)
    weight, bias = init_params(k_p)
    wt_pad, b_pad = prepare_params(weight, bias)   # one-time transpose/pad/bf16 cast

    out = mnist_model_forward(xb, wt_pad, b_pad)
    out = jax.block_until_ready(out)
    assert out.shape == (2, INP_SIZE)

    # Reference in matching precision (bf16 inputs, f32 accumulate) — tight check,
    # plus a loose check against the pure-f32 torch-equivalent math.
    x2d = xb.reshape(-1, INP_SIZE)
    ref_bf16 = jnp.dot(x2d.astype(jnp.bfloat16), weight.T.astype(jnp.bfloat16),
                       preferred_element_type=jnp.float32) + bias
    ref_f32 = x2d @ weight.T + bias
    assert jnp.allclose(out, ref_bf16, atol=2e-3, rtol=2e-3)
    assert jnp.allclose(out, ref_f32, atol=5e-2, rtol=5e-2)

    print("KERNEL_OK")
</pallas_src>

<mosaic_0001>
module attributes {stable_mosaic.version = 11 : i64} {
  func.func @linear_kernel(%arg0: i32, %arg1: memref<8x896xbf16, #tpu.memory_space<vmem>>, %arg2: memref<896x896xbf16, #tpu.memory_space<vmem>>, %arg3: memref<1x896xf32, #tpu.memory_space<vmem>>, %arg4: memref<8x896xf32, #tpu.memory_space<vmem>>) attributes {dimension_semantics = [#tpu.dimension_semantics<parallel>], iteration_bounds = array<i64: 1>, scalar_prefetch = 0 : i64, scratch_operands = 0 : i64, tpu.core_type = #tpu.core_type<tc>, window_params = [{transform_indices = @transform_0, window_bounds = array<i64: 8, 896>}, {pipeline_mode = #tpu.pipeline_mode<synchronous>, transform_indices = @transform_1, window_bounds = array<i64: 896, 896>}, {pipeline_mode = #tpu.pipeline_mode<synchronous>, transform_indices = @transform_2, window_bounds = array<i64: 1, 896>}, {transform_indices = @transform_3, window_bounds = array<i64: 8, 896>}]} {
    %c0 = arith.constant 0 : index
    %c0_0 = arith.constant 0 : index
    %0 = vector.load %arg1[%c0, %c0_0] : memref<8x896xbf16, #tpu.memory_space<vmem>>, vector<8x896xbf16>
    %c0_1 = arith.constant 0 : index
    %c0_2 = arith.constant 0 : index
    %1 = vector.load %arg2[%c0_1, %c0_2] : memref<896x896xbf16, #tpu.memory_space<vmem>>, vector<896x896xbf16>
    %cst = arith.constant dense<0.000000e+00> : vector<8x896xf32>
    %2 = tpu.matmul %0, %1, %cst {dimension_numbers = #tpu.dot_dimension_numbers<[1], [0], [0], [1], [0, 0, 1, 1], [], []>} : vector<8x896xbf16>, vector<896x896xbf16>, vector<8x896xf32> -> vector<8x896xf32>
    %c0_3 = arith.constant 0 : index
    %c0_4 = arith.constant 0 : index
    %3 = vector.load %arg3[%c0_3, %c0_4] : memref<1x896xf32, #tpu.memory_space<vmem>>, vector<1x896xf32>
    %4 = vector.broadcast %3 : vector<1x896xf32> to vector<8x896xf32>
    %5 = arith.addf %2, %4 : vector<8x896xf32>
    %c0_5 = arith.constant 0 : index
    %c0_6 = arith.constant 0 : index
    %6 = vector.load %arg4[%c0_5, %c0_6] : memref<8x896xf32, #tpu.memory_space<vmem>>, vector<8x896xf32>
    tpu.vector_store %arg4[%c0_5, %c0_6], %5 {strides = array<i32>} : memref<8x896xf32, #tpu.memory_space<vmem>>, vector<8x896xf32>,
    return
  }
  func.func @transform_0(%arg0: i32) -> (i32, i32) {
    %c0_i32 = arith.constant 0 : i32
    %c0_i32_0 = arith.constant 0 : i32
    return %arg0, %c0_i32 : i32, i32
  }
  func.func @transform_1(%arg0: i32) -> (i32, i32) {
    %c0_i32 = arith.constant 0 : i32
    %c0_i32_0 = arith.constant 0 : i32
    %c0_i32_1 = arith.constant 0 : i32
    return %c0_i32, %c0_i32_0 : i32, i32
  }
  func.func @transform_2(%arg0: i32) -> (i32, i32) {
    %c0_i32 = arith.constant 0 : i32
    %c0_i32_0 = arith.constant 0 : i32
    %c0_i32_1 = arith.constant 0 : i32
    return %c0_i32, %c0_i32_0 : i32, i32
  }
  func.func @transform_3(%arg0: i32) -> (i32, i32) {
    %c0_i32 = arith.constant 0 : i32
    %c0_i32_0 = arith.constant 0 : i32
    return %arg0, %c0_i32 : i32, i32
  }
}

</mosaic_0001>

<bundles_post_ra>
// kernel: mnist_model_forward.1
= control target key start
LH: loop header
LB: loop body
LE: loop exit
PB: predicated region body
PF: predicated region fallthrough
CT: control target
= control target key end

     0   :  { %8 = vsyncpa [#allocation3], 0  ;;  %s4553_s0 = inlined_call_operand.vmem [shape: bf16[8,896], index: 0, kind: input, shape index: {}]   ;;  %s4554_s1 = inlined_call_operand.hbm [shape: bf16[896,896], index: 1, kind: input, shape index: {}]   ;;  %s4555_s2 = inlined_call_operand.hbm [shape: f32[1,896], index: 2, kind: input, shape index: {}]   ;;  %s4556_s3 = inlined_call_operand.vmem [shape: f32[8,896], index: 3, kind: output, shape index: {}]  }
   0x1   :  { %9 = vsyncpa [#allocation5], 0  ;;  %s4393_s12 = smov [#allocation2]   ;;  %s4345_s16 = scalar_lea.hbm %s4554_s1, 50176 }
   0x2   :  { %s17_s13 = sshll.u32 %s4393_s12, 4  ;;  %p4346_p0 = scmp.ne.s32.totalorder %s4554_s1, %s4345_s16  ;;  %s18_s13 = int_to_ptr.vmem [resolvable:$true] %s17_s13 }
   0x3   :  { %p4349_p1 = scmp.lt.u32.totalorder %s4345_s16, %s4554_s1 }
   0x5   :  { %p4351_p2 = pnand %p4349_p1, %p4346_p0 }
   0x7   :  { %4354 = shalt.err (!%p4351_p2)
}
   0x8   :  { %s4355_s21 = scalar_lea.vmem %s18_s13, 50176  ;;  %p4360_p4 = scmp.lt.s32.totalorder %s18_s13, %s18_s13 }
   0x9   :  { %p4356_p3 = scmp.ne.s32.totalorder %s18_s13, %s4355_s21  ;;  %p4361_p5 = scmp.lt.s32.totalorder %s4355_s21, %s4355_s21 }
   0xb   :  { %p4362_p6 = por %p4361_p5, %p4360_p4 }
   0xd   :  { %p4363_p7 = pnand %p4362_p6, %p4356_p3 }
   0xf   :  { %4366 = shalt.err (!%p4363_p7)
}
  0x10   :  { %s4394_s22 = smov 448   ;;  %s4395_s23 = smov 28  }
  0x11   :  { %23 = dma.hbm_to_vmem [thread:$0]  %s4554_s1, 50176, %s18_s13, [#allocation3], %s4394_s22, %s4394_s22, %s4395_s23  }
  0x12   :  { %s4396_s26 = smov [#allocation4]   ;;  %s4367_s30 = scalar_lea.hbm %s4555_s2, 112 }
  0x13   :  { %s30_s27 = sshll.u32 %s4396_s26, 4  ;;  %p4368_p8 = scmp.ne.s32.totalorder %s4555_s2, %s4367_s30  ;;  %s31_s27 = int_to_ptr.vmem [resolvable:$true] %s30_s27 }
  0x14   :  { %p4371_p9 = scmp.lt.u32.totalorder %s4367_s30, %s4555_s2 }
  0x16   :  { %p4373_p10 = pnand %p4371_p9, %p4368_p8 }
  0x18   :  { %4376 = shalt.err (!%p4373_p10)
}
  0x19   :  { %s4377_s8 = scalar_lea.vmem %s31_s27, 112  ;;  %s4381_s1 = scalar_lea.vmem %s31_s27, 128 }
  0x1a   :  { %p4378_p11 = scmp.ne.s32.totalorder %s31_s27, %s4377_s8  ;;  %p4382_p12 = scmp.lt.s32.totalorder %s31_s27, %s31_s27 }
  0x1b   :  { %p4383_p13 = scmp.lt.s32.totalorder %s4381_s1, %s4377_s8 }
  0x1d   :  { %p4384_p0 = por %p4383_p13, %p4382_p12 }
  0x1f   :  { %p4385_p1 = pnand %p4384_p0, %p4378_p11 }
  0x21   :  { %4388 = shalt.err (!%p4385_p1)
}
  0x22   :  { %33 = dma.hbm_to_vmem [thread:$0]  %s4555_s2, 112, %s31_s27, [#allocation5]  }
  0x23   :  { %4389 = dma.done.wait [#allocation3], 50176  }
  0x24   :  { %4390 = vsyncadd [#allocation3], 4294917120 }
  0x25   :  { %4391 = dma.done.wait [#allocation5], 112  }
  0x26   :  { %4392 = vsyncadd [#allocation5], 4294967184  ;;  %v3777_v0 = vld [vmem:[#allocation2 + $0x4] ss:$28 sps:$4 sm:$0xff]   ;;  %v3783_v4 = vld [vmem:[#allocation2 + $0x3c] ss:$28 sps:$4 sm:$0xff]  }
  0x27   :  { %v3779_v1 = vld [vmem:[#allocation2 + $0x384] ss:$28 sps:$4 sm:$0xff]   ;;  %2571 = vmatprep.subr.bf16.mxu1 %v3777_v0  ;;  %v3785_v5 = vld [vmem:[#allocation2 + $0x3bc] ss:$28 sps:$4 sm:$0xff]   ;;  %v3789_v8 = vld [vmem:[#allocation2 + $0x74] ss:$28 sps:$4 sm:$0xff]  }
  0x28   :  { %v3781_v2 = vld [vmem:[#allocation2] ss:$28 sps:$4 sm:$0xff]   ;;  %2612 = vmatprep.subr.bf16.mxu0 %v3779_v1  ;;  %v3787_v6 = vld [vmem:[#allocation2 + $0x38] ss:$28 sps:$4 sm:$0xff]   ;;  %v3793_v10 = vld [vmem:[#allocation2 + $0x70] ss:$28 sps:$4 sm:$0xff]  }
  0x29   :  { %v3782_v3 = vld [vmem:[#allocation2 + $0x380] ss:$28 sps:$4 sm:$0xff]   ;;  %2572 = vmatpush1.bf16.msra.mxu1 %v3781_v2  ;;  %v3788_v7 = vld [vmem:[#allocation2 + $0x3b8] ss:$28 sps:$4 sm:$0xff]   ;;  %v3794_v11 = vld [vmem:[#allocation2 + $0x3f0] ss:$28 sps:$4 sm:$0xff]  }
  0x2a   :  { %2613 = vmatpush1.bf16.msra.mxu0 %v3782_v3  ;;  %2573 = vmatprep.subr.bf16.mxu1 %v3783_v4  ;;  %v3791_v9 = vld [vmem:[#allocation2 + $0x3f4] ss:$28 sps:$4 sm:$0xff]   ;;  %v3795_v12 = vld [vmem:[#allocation2 + $0xac] ss:$28 sps:$4 sm:$0xff]   ;;  %v3801_v16 = vld [vmem:[#allocation2 + $0xe4] ss:$28 sps:$4 sm:$0xff]  }
  0x2b   :  { %2614 = vmatprep.subr.bf16.mxu0 %v3785_v5  ;;  %v3797_v13 = vld [vmem:[#allocation2 + $0x42c] ss:$28 sps:$4 sm:$0xff]   ;;  %v3803_v17 = vld [vmem:[#allocation2 + $0x464] ss:$28 sps:$4 sm:$0xff]   ;;  %v3807_v20 = vld [vmem:[#allocation2 + $0x11c] ss:$28 sps:$4 sm:$0xff]  }
  0x2c   :  { %v3799_v14 = vld [vmem:[#allocation2 + $0xa8] ss:$28 sps:$4 sm:$0xff]   ;;  %v3805_v18 = vld [vmem:[#allocation2 + $0xe0] ss:$28 sps:$4 sm:$0xff]   ;;  %v3811_v22 = vld [vmem:[#allocation2 + $0x118] ss:$28 sps:$4 sm:$0xff]  }
  0x2d   :  { %2574 = vmatpush1.bf16.msra.mxu1 %v3787_v6  ;;  %v3800_v15 = vld [vmem:[#allocation2 + $0x428] ss:$28 sps:$4 sm:$0xff]   ;;  %v3806_v19 = vld [vmem:[#allocation2 + $0x460] ss:$28 sps:$4 sm:$0xff]   ;;  %v3812_v23 = vld [vmem:[#allocation2 + $0x498] ss:$28 sps:$4 sm:$0xff]  }
  0x2e   :  { %2615 = vmatpush1.bf16.msra.mxu0 %v3788_v7  ;;  %2575 = vmatprep.subr.bf16.mxu1 %v3789_v8  ;;  %v3809_v21 = vld [vmem:[#allocation2 + $0x49c] ss:$28 sps:$4 sm:$0xff]   ;;  %v3813_v24 = vld [vmem:[#allocation2 + $0x154] ss:$28 sps:$4 sm:$0xff]   ;;  %v3819_v28 = vld [vmem:[#allocation2 + $0x18c] ss:$28 sps:$4 sm:$0xff]  }
  0x2f   :  { %2616 = vmatprep.subr.bf16.mxu0 %v3791_v9  ;;  %v3815_v25 = vld [vmem:[#allocation2 + $0x4d4] ss:$28 sps:$4 sm:$0xff]   ;;  %v3821_v29 = vld [vmem:[#allocation2 + $0x50c] ss:$28 sps:$4 sm:$0xff]   ;;  %v3825_v32 = vld [vmem:[#allocation2 + $0x1c4] ss:$28 sps:$4 sm:$0xff]  }
  0x30   :  { %v3817_v26 = vld [vmem:[#allocation2 + $0x150] ss:$28 sps:$4 sm:$0xff]   ;;  %v3823_v30 = vld [vmem:[#allocation2 + $0x188] ss:$28 sps:$4 sm:$0xff]   ;;  %v3829_v34 = vld [vmem:[#allocation2 + $0x1c0] ss:$28 sps:$4 sm:$0xff]  }
  0x31   :  { %2576 = vmatpush1.bf16.msra.mxu1 %v3793_v10  ;;  %v3818_v27 = vld [vmem:[#allocation2 + $0x4d0] ss:$28 sps:$4 sm:$0xff]   ;;  %v3824_v31 = vld [vmem:[#allocation2 + $0x508] ss:$28 sps:$4 sm:$0xff]   ;;  %v3830_v35 = vld [vmem:[#allocation2 + $0x540] ss:$28 sps:$4 sm:$0xff]  }
  0x32   :  { %2617 = vmatpush1.bf16.msra.mxu0 %v3794_v11  ;;  %2577 = vmatprep.subr.bf16.mxu1 %v3795_v12  ;;  %v3827_v33 = vld [vmem:[#allocation2 + $0x544] ss:$28 sps:$4 sm:$0xff]   ;;  %v3831_v36 = vld [vmem:[#allocation2 + $0x1fc] ss:$28 sps:$4 sm:$0xff]   ;;  %v3837_v40 = vld [vmem:[#allocation2 + $0x234] ss:$28 sps:$4 sm:$0xff]  }
  0x33   :  { %2618 = vmatprep.subr.bf16.mxu0 %v3797_v13  ;;  %v3833_v37 = vld [vmem:[#allocation2 + $0x57c] ss:$28 sps:$4 sm:$0xff]   ;;  %v3839_v41 = vld [vmem:[#allocation2 + $0x5b4] ss:$28 sps:$4 sm:$0xff]   ;;  %v3843_v44 = vld [vmem:[#allocation2 + $0x26c] ss:$28 sps:$4 sm:$0xff]  }
  0x34   :  { %v3835_v38 = vld [vmem:[#allocation2 + $0x1f8] ss:$28 sps:$4 sm:$0xff]   ;;  %v3841_v42 = vld [vmem:[#allocation2 + $0x230] ss:$28 sps:$4 sm:$0xff]   ;;  %v41_v46 = vld [vmem:[%s4553_s0] sm:$0xff]  ;;  %vm4399_vm0 = vmmov 0  }
  0x35   :  { %2578 = vmatpush1.bf16.msra.mxu1 %v3799_v14  ;;  %v3836_v39 = vld [vmem:[#allocation2 + $0x578] ss:$28 sps:$4 sm:$0xff]   ;;  %v3842_v43 = vld [vmem:[#allocation2 + $0x5b0] ss:$28 sps:$4 sm:$0xff]   ;;  %v4447_v47 = vcombine.high %v41_v46, %v41_v46  ;;  %v3847_v49 = vld [vmem:[#allocation2 + $0x268] ss:$28 sps:$4 sm:$0xff]   ;;  %v4456_v6 = vcombine.low %v41_v46, %v41_v46 }
  0x36   :  { %2619 = vmatpush1.bf16.msra.mxu0 %v3800_v15  ;;  %2579 = vmatprep.subr.bf16.mxu1 %v3801_v16  ;;  %v3845_v45 = vld [vmem:[#allocation2 + $0x5ec] ss:$28 sps:$4 sm:$0xff]   ;;  %v3849_v52 = vld [vmem:[#allocation2 + $0x2a4] ss:$28 sps:$4 sm:$0xff]   ;;  %v3855_v56 = vld [vmem:[#allocation2 + $0x2dc] ss:$28 sps:$4 sm:$0xff]  }
  0x37   :  { %2620 = vmatprep.subr.bf16.mxu0 %v3803_v17  ;;  %v42_v48 = vld [vmem:[%s4553_s0 + $0x8] sm:$0xff]  ;;  %v3851_v53 = vld [vmem:[#allocation2 + $0x624] ss:$28 sps:$4 sm:$0xff]   ;;  %2603 = vmatprep.mubr.bf16.mxu1 %v4447_v47  ;;  %v3857_v57 = vld [vmem:[#allocation2 + $0x65c] ss:$28 sps:$4 sm:$0xff]  }
  0x38   :  { %v3848_v50 = vld [vmem:[#allocation2 + $0x5e8] ss:$28 sps:$4 sm:$0xff]   ;;  %v4452_v51 = vcombine.high %v42_v48, %v42_v48  ;;  %v3853_v54 = vld [vmem:[#allocation2 + $0x2a0] ss:$28 sps:$4 sm:$0xff]   ;;  %v3859_v58 = vld [vmem:[#allocation2 + $0x2d8] ss:$28 sps:$4 sm:$0xff]   ;;  %v4458_v7 = vcombine.low %v42_v48, %v42_v48 }
  0x39   :  { %2580 = vmatpush1.bf16.msra.mxu1 %v3805_v18  ;;  %v3854_v55 = vld [vmem:[#allocation2 + $0x620] ss:$28 sps:$4 sm:$0xff]   ;;  %v3860_v59 = vld [vmem:[#allocation2 + $0x658] ss:$28 sps:$4 sm:$0xff]   ;;  %v3865_v62 = vld [vmem:[#allocation2 + $0x310] ss:$28 sps:$4 sm:$0xff]  }
  0x3a   :  { %2621 = vmatpush1.bf16.msra.mxu0 %v3806_v19  ;;  %2581 = vmatprep.subr.bf16.mxu1 %v3807_v20  ;;  %v3861_v60 = vld [vmem:[#allocation2 + $0x314] ss:$28 sps:$4 sm:$0xff]   ;;  %v3867_v0 = vld [vmem:[#allocation2 + $0x34c] ss:$28 sps:$4 sm:$0xff]   ;;  %v3878_v4 = vld [vmem:[#allocation2 + $0x704] ss:$28 sps:$4 sm:$0xff]  }
  0x3b   :  { %2622 = vmatprep.subr.bf16.mxu0 %v3809_v21  ;;  %2644 = vmatprep.mubr.bf16.mxu0 %v4452_v51  ;;  %v3863_v61 = vld [vmem:[#allocation2 + $0x694] ss:$28 sps:$4 sm:$0xff]   ;;  %v3869_v1 = vld [vmem:[#allocation2 + $0x6cc] ss:$28 sps:$4 sm:$0xff]   ;;  %v3876_v8 = vld [vmem:[#allocation2 + $0x700] ss:$28 sps:$4 sm:$0xff]  }
  0x3c   :  { %v3866_v63 = vld [vmem:[#allocation2 + $0x690] ss:$28 sps:$4 sm:$0xff]   ;;  %v3871_v2 = vld [vmem:[#allocation2 + $0x348] ss:$28 sps:$4 sm:$0xff]   ;;  %v3885_v10 = vld [vmem:[#allocation2 + $0x73c] ss:$28 sps:$4 sm:$0xff]  }
  0x3d   :  { %2582 = vmatpush1.bf16.msra.mxu1 %v3811_v22  ;;  %v3872_v3 = vld [vmem:[#allocation2 + $0x6c8] ss:$28 sps:$4 sm:$0xff]   ;;  %v3883_v12 = vld [vmem:[#allocation2 + $0x738] ss:$28 sps:$4 sm:$0xff]   ;;  %v3886_v13 = vld [vmem:[#allocation2 + $0x40] ss:$28 sps:$4 sm:$0xff]  }
  0x3e   :  { %2623 = vmatpush1.bf16.msra.mxu0 %v3812_v23  ;;  %2583 = vmatprep.subr.bf16.mxu1 %v3813_v24  ;;  %v3881_v5 = vld [vmem:[#allocation2 + $0xc] ss:$28 sps:$4 sm:$0xff]   ;;  %v3888_v11 = vld [vmem:[#allocation2 + $0x44] ss:$28 sps:$4 sm:$0xff]   ;;  %v3891_v14 = vld [vmem:[#allocation2 + $0x774] ss:$28 sps:$4 sm:$0xff]  }
  0x3f   :  { %2624 = vmatprep.subr.bf16.mxu0 %v3815_v25  ;;  %v3879_v9 = vld [vmem:[#allocation2 + $0x8] ss:$28 sps:$4 sm:$0xff]   ;;  %v3894_v15 = vld [vmem:[#allocation2 + $0x7c] ss:$28 sps:$4 sm:$0xff]   ;;  %v3889_v16 = vld [vmem:[#allocation2 + $0x770] ss:$28 sps:$4 sm:$0xff]  }
  0x40   :  { %v3892_v17 = vld [vmem:[#allocation2 + $0x78] ss:$28 sps:$4 sm:$0xff]   ;;  %v3897_v18 = vld [vmem:[#allocation2 + $0x7ac] ss:$28 sps:$4 sm:$0xff]   ;;  %v3903_v22 = vld [vmem:[#allocation2 + $0x7e4] ss:$28 sps:$4 sm:$0xff]  }
  0x41   :  { %2584 = vmatpush1.bf16.msra.mxu1 %v3817_v26  ;;  %v3900_v19 = vld [vmem:[#allocation2 + $0xb4] ss:$28 sps:$4 sm:$0xff]   ;;  %v3895_v20 = vld [vmem:[#allocation2 + $0x7a8] ss:$28 sps:$4 sm:$0xff]   ;;  %v3901_v24 = vld [vmem:[#allocation2 + $0x7e0] ss:$28 sps:$4 sm:$0xff]  }
  0x42   :  { %2625 = vmatpush1.bf16.msra.mxu0 %v3818_v27  ;;  %2585 = vmatprep.subr.bf16.mxu1 %v3819_v28  ;;  %v3898_v21 = vld [vmem:[#allocation2 + $0xb0] ss:$28 sps:$4 sm:$0xff]   ;;  %v3904_v25 = vld [vmem:[#allocation2 + $0xe8] ss:$28 sps:$4 sm:$0xff]   ;;  %v3909_v26 = vld [vmem:[#allocation2 + $0x81c] ss:$28 sps:$4 sm:$0xff]  }
  0x43   :  { %2626 = vmatprep.subr.bf16.mxu0 %v3821_v29  ;;  %v3906_v23 = vld [vmem:[#allocation2 + $0xec] ss:$28 sps:$4 sm:$0xff]   ;;  %v3912_v27 = vld [vmem:[#allocation2 + $0x124] ss:$28 sps:$4 sm:$0xff]   ;;  %v3907_v28 = vld [vmem:[#allocation2 + $0x818] ss:$28 sps:$4 sm:$0xff]  }
  0x44   :  { %v3910_v29 = vld [vmem:[#allocation2 + $0x120] ss:$28 sps:$4 sm:$0xff]   ;;  %v3931_v46 = vld [vmem:[#allocation2 + $0x8f8] ss:$28 sps:$4 sm:$0xff]  }
  0x45   :  { %2586 = vmatpush1.bf16.msra.mxu1 %v3823_v30  ;;  %v3915_v30 = vld [vmem:[#allocation2 + $0x854] ss:$28 sps:$4 sm:$0xff]   ;;  %v3934_v48 = vld [vmem:[#allocation2 + $0x200] ss:$28 sps:$4 sm:$0xff]  }
  0x46   :  { %2627 = vmatpush1.bf16.msra.mxu0 %v3824_v31  ;;  %2587 = vmatprep.subr.bf16.mxu1 %v3825_v32  ;;  %v3918_v31 = vld [vmem:[#allocation2 + $0x15c] ss:$28 sps:$4 sm:$0xff]   ;;  %v4466_v32 = vld [vmem:[%s4553_s0 + $0x10] sm:$0xff] }
  0x47   :  { %2628 = vmatprep.subr.bf16.mxu0 %v3827_v33  ;;  %v3913_v33 = vld [vmem:[#allocation2 + $0x850] ss:$28 sps:$4 sm:$0xff]  }
  0x49   :  { %2588 = vmatpush1.bf16.msra.mxu1 %v3829_v34  ;;  %v4470_v34 = vcombine.high %v4466_v32, %v4466_v32 }
  0x4a   :  { %2629 = vmatpush1.bf16.msra.mxu0 %v3830_v35  ;;  %2589 = vmatprep.subr.bf16.mxu1 %v3831_v36  ;;  %v3916_v35 = vld [vmem:[#allocation2 + $0x158] ss:$28 sps:$4 sm:$0xff]   ;;  %v3921_v36 = vld [vmem:[#allocation2 + $0x88c] ss:$28 sps:$4 sm:$0xff]  }
  0x4b   :  { %2630 = vmatprep.subr.bf16.mxu0 %v3833_v37  ;;  %v3924_v37 = vld [vmem:[#allocation2 + $0x194] ss:$28 sps:$4 sm:$0xff]  }
  0x4d   :  { %2590 = vmatpush1.bf16.msra.mxu1 %v3835_v38  ;;  %v3919_v38 = vld [vmem:[#allocation2 + $0x888] ss:$28 sps:$4 sm:$0xff]  }
  0x4e   :  { %2631 = vmatpush1.bf16.msra.mxu0 %v3836_v39  ;;  %2591 = vmatprep.subr.bf16.mxu1 %v3837_v40  ;;  %v3922_v39 = vld [vmem:[#allocation2 + $0x190] ss:$28 sps:$4 sm:$0xff]   ;;  %v3927_v40 = vld [vmem:[#allocation2 + $0x8c4] ss:$28 sps:$4 sm:$0xff]  }
  0x4f   :  { %2632 = vmatprep.subr.bf16.mxu0 %v3839_v41  ;;  %v3930_v41 = vld [vmem:[#allocation2 + $0x1cc] ss:$28 sps:$4 sm:$0xff]  }
  0x51   :  { %2592 = vmatpush1.bf16.msra.mxu1 %v3841_v42  ;;  %v3925_v42 = vld [vmem:[#allocation2 + $0x8c0] ss:$28 sps:$4 sm:$0xff]  }
  0x52   :  { %2633 = vmatpush1.bf16.msra.mxu0 %v3842_v43  ;;  %2593 = vmatprep.subr.bf16.mxu1 %v3843_v44  ;;  %v3928_v43 = vld [vmem:[#allocation2 + $0x1c8] ss:$28 sps:$4 sm:$0xff]   ;;  %v3933_v44 = vld [vmem:[#allocation2 + $0x8fc] ss:$28 sps:$4 sm:$0xff]  }
  0x53   :  { %2634 = vmatprep.subr.bf16.mxu0 %v3845_v45  ;;  %v3936_v45 = vld [vmem:[#allocation2 + $0x204] ss:$28 sps:$4 sm:$0xff]  }
  0x55   :  { %2594 = vmatpush1.bf16.msra.mxu1 %v3847_v49  ;;  %v3939_v49 = vld [vmem:[#allocation2 + $0x934] ss:$28 sps:$4 sm:$0xff]  }
  0x56   :  { %2635 = vmatpush1.bf16.msra.mxu0 %v3848_v50  ;;  %2595 = vmatprep.subr.bf16.mxu1 %v3849_v52  ;;  %v3942_v50 = vld [vmem:[#allocation2 + $0x23c] ss:$28 sps:$4 sm:$0xff]   ;;  %v3937_v52 = vld [vmem:[#allocation2 + $0x930] ss:$28 sps:$4 sm:$0xff]  }
  0x57   :  { %2636 = vmatprep.subr.bf16.mxu0 %v3851_v53  ;;  %v3940_v53 = vld [vmem:[#allocation2 + $0x238] ss:$28 sps:$4 sm:$0xff]  }
  0x59   :  { %2596 = vmatpush1.bf16.msra.mxu1 %v3853_v54  ;;  %v3945_v54 = vld [vmem:[#allocation2 + $0x96c] ss:$28 sps:$4 sm:$0xff]  }
  0x5a   :  { %2637 = vmatpush1.bf16.msra.mxu0 %v3854_v55  ;;  %2597 = vmatprep.subr.bf16.mxu1 %v3855_v56  ;;  %v3948_v55 = vld [vmem:[#allocation2 + $0x274] ss:$28 sps:$4 sm:$0xff]   ;;  %v3943_v56 = vld [vmem:[#allocation2 + $0x968] ss:$28 sps:$4 sm:$0xff]  }
  0x5b   :  { %2638 = vmatprep.subr.bf16.mxu0 %v3857_v57  ;;  %v3946_v57 = vld [vmem:[#allocation2 + $0x270] ss:$28 sps:$4 sm:$0xff]  }
  0x5d   :  { %2598 = vmatpush1.bf16.msra.mxu1 %v3859_v58  ;;  %v3951_v58 = vld [vmem:[#allocation2 + $0x9a4] ss:$28 sps:$4 sm:$0xff]  }
  0x5e   :  { %2639 = vmatpush1.bf16.msra.mxu0 %v3860_v59  ;;  %2599 = vmatprep.subr.bf16.mxu1 %v3861_v60  ;;  %v3954_v59 = vld [vmem:[#allocation2 + $0x2ac] ss:$28 sps:$4 sm:$0xff]   ;;  %v3949_v60 = vld [vmem:[#allocation2 + $0x9a0] ss:$28 sps:$4 sm:$0xff]  }
  0x5f   :  { %2640 = vmatprep.subr.bf16.mxu0 %v3863_v61  ;;  %v3952_v61 = vld [vmem:[#allocation2 + $0x2a8] ss:$28 sps:$4 sm:$0xff]  }
  0x61   :  { %2600 = vmatpush1.bf16.msra.mxu1 %v3865_v62  ;;  %v3957_v62 = vld [vmem:[#allocation2 + $0x9dc] ss:$28 sps:$4 sm:$0xff]  }
  0x62   :  { %2641 = vmatpush1.bf16.msra.mxu0 %v3866_v63  ;;  %2601 = vmatprep.subr.bf16.mxu1 %v3867_v0  ;;  %v3960_v63 = vld [vmem:[#allocation2 + $0x2e4] ss:$28 sps:$4 sm:$0xff]   ;;  %v3955_v0 = vld [vmem:[#allocation2 + $0x9d8] ss:$28 sps:$4 sm:$0xff]  }
  0x63   :  { %2642 = vmatprep.subr.bf16.mxu0 %v3869_v1  ;;  %v3958_v1 = vld [vmem:[#allocation2 + $0x2e0] ss:$28 sps:$4 sm:$0xff]  }
  0x65   :  { %2602 = vmatpush1.bf16.msra.mxu1 %v3871_v2  ;;  %v3963_v2 = vld [vmem:[#allocation2 + $0xa14] ss:$28 sps:$4 sm:$0xff]  }
  0x66   :  { %2643 = vmatpush1.bf16.msra.mxu0 %v3872_v3  ;;  %2735 = vmatprep.subr.bf16.mxu1 %v3881_v5  ;;  %v3966_v3 = vld [vmem:[#allocation2 + $0x31c] ss:$28 sps:$4 sm:$0xff]  }
  0x67   :  { %2653 = vmatprep.subr.bf16.mxu0 %v3878_v4  ;;  %v3961_v4 = vld [vmem:[#allocation2 + $0xa10] ss:$28 sps:$4 sm:$0xff]   ;;  %v3964_v5 = vld [vmem:[#allocation2 + $0x318] ss:$28 sps:$4 sm:$0xff]  }
  0x68   :  { %2604 = vmatmul.mubr.bf16.vlgmr.msra.gmra.mrb[0].mxu1 %v4456_v6 }
  0x69   :  { %2645 = vmatmul.mubr.bf16.vlgmr.msra.gmra.mrb[0].mxu0 %v4458_v7  ;;  %2736 = vmatpush1.bf16.msra.mxu1 %v3879_v9  ;;  %v3972_v9 = vld [vmem:[#allocation2 + $0x354] ss:$28 sps:$4 sm:$0xff]  }
  0x6a   :  { %2654 = vmatpush1.bf16.msra.mxu0 %v3876_v8  ;;  %2737 = vmatprep.subr.bf16.mxu1 %v3888_v11  ;;  %v3969_v8 = vld [vmem:[#allocation2 + $0xa4c] ss:$28 sps:$4 sm:$0xff]  }
  0x6b   :  { %2655 = vmatprep.subr.bf16.mxu0 %v3885_v10  ;;  %2767 = vmatprep.mubr.bf16.mxu1 %v4447_v47  ;;  %v3967_v10 = vld [vmem:[#allocation2 + $0xa48] ss:$28 sps:$4 sm:$0xff]   ;;  %v3970_v11 = vld [vmem:[#allocation2 + $0x350] ss:$28 sps:$4 sm:$0xff]  }
  0x6c   :  { %2685 = vmatprep.mubr.bf16.mxu0 %v4470_v34 }
  0x6d   :  { %2738 = vmatpush1.bf16.msra.mxu1 %v3886_v13  ;;  %v3979_v13 = vld [vmem:[#allocation2 + $0x38c] ss:$28 sps:$4 sm:$0xff]  }
  0x6e   :  { %2656 = vmatpush1.bf16.msra.mxu0 %v3883_v12  ;;  %2739 = vmatprep.subr.bf16.mxu1 %v3894_v15  ;;  %v3976_v12 = vld [vmem:[#allocation2 + $0xa84] ss:$28 sps:$4 sm:$0xff]   ;;  %v4475_v15 = vcombine.low %v4466_v32, %v4466_v32 }
  0x6f   :  { %2657 = vmatprep.subr.bf16.mxu0 %v3891_v14  ;;  %v3974_v14 = vld [vmem:[#allocation2 + $0xa80] ss:$28 sps:$4 sm:$0xff]  }
  0x70   :  { %v3999_v32 = vld [vmem:[#allocation2 + $0xb60] ss:$28 sps:$4 sm:$0xff]  }
  0x71   :  { %2740 = vmatpush1.bf16.msra.mxu1 %v3892_v17  ;;  %v3983_v17 = vld [vmem:[#allocation2 + $0xabc] ss:$28 sps:$4 sm:$0xff]  }
  0x72   :  { %2658 = vmatpush1.bf16.msra.mxu0 %v3889_v16  ;;  %2741 = vmatprep.subr.bf16.mxu1 %v3900_v19  ;;  %v3977_v16 = vld [vmem:[#allocation2 + $0x388] ss:$28 sps:$4 sm:$0xff]   ;;  %v3981_v19 = vld [vmem:[#allocation2 + $0xab8] ss:$28 sps:$4 sm:$0xff]  }
  0x73   :  { %2659 = vmatprep.subr.bf16.mxu0 %v3897_v18  ;;  %v3986_v18 = vld [vmem:[#allocation2 + $0x3c4] ss:$28 sps:$4 sm:$0xff]  }
  0x75   :  { %2742 = vmatpush1.bf16.msra.mxu1 %v3898_v21  ;;  %v3989_v21 = vld [vmem:[#allocation2 + $0xaf4] ss:$28 sps:$4 sm:$0xff]  }
  0x76   :  { %2660 = vmatpush1.bf16.msra.mxu0 %v3895_v20  ;;  %2743 = vmatprep.subr.bf16.mxu1 %v3906_v23  ;;  %v3984_v20 = vld [vmem:[#allocation2 + $0x3c0] ss:$28 sps:$4 sm:$0xff]   ;;  %v4397_v23 = vmov 0  }
  0x77   :  { %2661 = vmatprep.subr.bf16.mxu0 %v3903_v22  ;;  %v3992_v22 = vld [vmem:[#allocation2 + $0x3fc] ss:$28 sps:$4 sm:$0xff]  }
  0x79   :  { %2744 = vmatpush1.bf16.msra.mxu1 %v3904_v25  ;;  %v3990_v25 = vld [vmem:[#allocation2 + $0x3f8] ss:$28 sps:$4 sm:$0xff]  }
  0x7a   :  { %2662 = vmatpush1.bf16.msra.mxu0 %v3901_v24  ;;  %2745 = vmatprep.subr.bf16.mxu1 %v3912_v27  ;;  %v3987_v24 = vld [vmem:[#allocation2 + $0xaf0] ss:$28 sps:$4 sm:$0xff]  }
  0x7b   :  { %2663 = vmatprep.subr.bf16.mxu0 %v3909_v26  ;;  %v3995_v26 = vld [vmem:[#allocation2 + $0xb2c] ss:$28 sps:$4 sm:$0xff]   ;;  %v3998_v27 = vld [vmem:[#allocation2 + $0x434] ss:$28 sps:$4 sm:$0xff]  }
  0x7d   :  { %2746 = vmatpush1.bf16.msra.mxu1 %v3910_v29  ;;  %v3996_v29 = vld [vmem:[#allocation2 + $0x430] ss:$28 sps:$4 sm:$0xff]  }
  0x7e   :  { %2664 = vmatpush1.bf16.msra.mxu0 %v3907_v28  ;;  %2747 = vmatprep.subr.bf16.mxu1 %v3918_v31  ;;  %v3993_v28 = vld [vmem:[#allocation2 + $0xb28] ss:$28 sps:$4 sm:$0xff]  }
  0x7f   :  { %2665 = vmatprep.subr.bf16.mxu0 %v3915_v30  ;;  %v4001_v30 = vld [vmem:[#allocation2 + $0xb64] ss:$28 sps:$4 sm:$0xff]   ;;  %v4004_v31 = vld [vmem:[#allocation2 + $0x46c] ss:$28 sps:$4 sm:$0xff]  }
  0x81   :  { %2748 = vmatpush1.bf16.msra.mxu1 %v3916_v35  ;;  %v4007_v35 = vld [vmem:[#allocation2 + $0xb9c] ss:$28 sps:$4 sm:$0xff]  }
  0x82   :  { %2666 = vmatpush1.bf16.msra.mxu0 %v3913_v33  ;;  %2749 = vmatprep.subr.bf16.mxu1 %v3924_v37  ;;  %v4002_v33 = vld [vmem:[#allocation2 + $0x468] ss:$28 sps:$4 sm:$0xff]   ;;  %v4005_v37 = vld [vmem:[#allocation2 + $0xb98] ss:$28 sps:$4 sm:$0xff]  }
  0x83   :  { %2667 = vmatprep.subr.bf16.mxu0 %v3921_v36  ;;  %v4010_v36 = vld [vmem:[#allocation2 + $0x4a4] ss:$28 sps:$4 sm:$0xff]  }
  0x85   :  { %2750 = vmatpush1.bf16.msra.mxu1 %v3922_v39  ;;  %v4013_v39 = vld [vmem:[#allocation2 + $0xbd4] ss:$28 sps:$4 sm:$0xff]  }
  0x86   :  { %2668 = vmatpush1.bf16.msra.mxu0 %v3919_v38  ;;  %2751 = vmatprep.subr.bf16.mxu1 %v3930_v41  ;;  %v4008_v38 = vld [vmem:[#allocation2 + $0x4a0] ss:$28 sps:$4 sm:$0xff]   ;;  %v4011_v41 = vld [vmem:[#allocation2 + $0xbd0] ss:$28 sps:$4 sm:$0xff]  }
  0x87   :  { %2669 = vmatprep.subr.bf16.mxu0 %v3927_v40  ;;  %v4016_v40 = vld [vmem:[#allocation2 + $0x4dc] ss:$28 sps:$4 sm:$0xff]  }
  0x89   :  { %2752 = vmatpush1.bf16.msra.mxu1 %v3928_v43  ;;  %v4019_v43 = vld [vmem:[#allocation2 + $0xc0c] ss:$28 sps:$4 sm:$0xff]  }
  0x8a   :  { %2670 = vmatpush1.bf16.msra.mxu0 %v3925_v42  ;;  %2753 = vmatprep.subr.bf16.mxu1 %v3936_v45  ;;  %v4014_v42 = vld [vmem:[#allocation2 + $0x4d8] ss:$28 sps:$4 sm:$0xff]   ;;  %v4017_v45 = vld [vmem:[#allocation2 + $0xc08] ss:$28 sps:$4 sm:$0xff]  }
  0x8b   :  { %2671 = vmatprep.subr.bf16.mxu0 %v3933_v44  ;;  %v4022_v44 = vld [vmem:[#allocation2 + $0x514] ss:$28 sps:$4 sm:$0xff]  }
  0x8d   :  { %2754 = vmatpush1.bf16.msra.mxu1 %v3934_v48  ;;  %v4026_v48 = vld [vmem:[#allocation2 + $0x54c] ss:$28 sps:$4 sm:$0xff]  }
  0x8e   :  { %2672 = vmatpush1.bf16.msra.mxu0 %v3931_v46  ;;  %2755 = vmatprep.subr.bf16.mxu1 %v3942_v50  ;;  %v4020_v46 = vld [vmem:[#allocation2 + $0x510] ss:$28 sps:$4 sm:$0xff]   ;;  %v4484_v50 = vld [vmem:[%s4553_s0 + $0x18] ss:$0 sps:$4 sm:$0xff]  }
  0x8f   :  { %2673 = vmatprep.subr.bf16.mxu0 %v3939_v49  ;;  %v4029_v49 = vld [vmem:[#allocation2 + $0x14] ss:$28 sps:$4 sm:$0xff]  }
  0x91   :  { %2756 = vmatpush1.bf16.msra.mxu1 %v3940_v53  ;;  %v4027_v53 = vld [vmem:[#allocation2 + $0x10] ss:$28 sps:$4 sm:$0xff]  }
  0x92   :  { %2674 = vmatpush1.bf16.msra.mxu0 %v3937_v52  ;;  %2757 = vmatprep.subr.bf16.mxu1 %v3948_v55  ;;  %v4024_v52 = vld [vmem:[#allocation2 + $0x548] ss:$28 sps:$4 sm:$0xff]  }
  0x93   :  { %2675 = vmatprep.subr.bf16.mxu0 %v3945_v54  ;;  %v4032_v54 = vld [vmem:[#allocation2 + $0x584] ss:$28 sps:$4 sm:$0xff]   ;;  %v4035_v55 = vld [vmem:[#allocation2 + $0x4c] ss:$28 sps:$4 sm:$0xff]  }
  0x95   :  { %2758 = vmatpush1.bf16.msra.mxu1 %v3946_v57  ;;  %v4033_v57 = vld [vmem:[#allocation2 + $0x48] ss:$28 sps:$4 sm:$0xff]  }
  0x96   :  { %2676 = vmatpush1.bf16.msra.mxu0 %v3943_v56  ;;  %2759 = vmatprep.subr.bf16.mxu1 %v3954_v59  ;;  %v4030_v56 = vld [vmem:[#allocation2 + $0x580] ss:$28 sps:$4 sm:$0xff]  }
  0x97   :  { %2677 = vmatprep.subr.bf16.mxu0 %v3951_v58  ;;  %v4038_v58 = vld [vmem:[#allocation2 + $0x5bc] ss:$28 sps:$4 sm:$0xff]   ;;  %v4041_v59 = vld [vmem:[#allocation2 + $0x84] ss:$28 sps:$4 sm:$0xff]  }
  0x99   :  { %2760 = vmatpush1.bf16.msra.mxu1 %v3952_v61  ;;  %v4039_v61 = vld [vmem:[#allocation2 + $0x80] ss:$28 sps:$4 sm:$0xff]  }
  0x9a   :  { %2678 = vmatpush1.bf16.msra.mxu0 %v3949_v60  ;;  %2761 = vmatprep.subr.bf16.mxu1 %v3960_v63  ;;  %v4036_v60 = vld [vmem:[#allocation2 + $0x5b8] ss:$28 sps:$4 sm:$0xff]  }
  0x9b   :  { %2679 = vmatprep.subr.bf16.mxu0 %v3957_v62  ;;  %v4044_v62 = vld [vmem:[#allocation2 + $0x5f4] ss:$28 sps:$4 sm:$0xff]   ;;  %v4047_v63 = vld [vmem:[#allocation2 + $0xbc] ss:$28 sps:$4 sm:$0xff]  }
  0x9d   :  { %2762 = vmatpush1.bf16.msra.mxu1 %v3958_v1  ;;  %v4045_v1 = vld [vmem:[#allocation2 + $0xb8] ss:$28 sps:$4 sm:$0xff]  }
  0x9e   :  { %2680 = vmatpush1.bf16.msra.mxu0 %v3955_v0  ;;  %2763 = vmatprep.subr.bf16.mxu1 %v3966_v3  ;;  %v4042_v0 = vld [vmem:[#allocation2 + $0x5f0] ss:$28 sps:$4 sm:$0xff]  }
  0x9f   :  { %2681 = vmatprep.subr.bf16.mxu0 %v3963_v2  ;;  %v4050_v2 = vld [vmem:[#allocation2 + $0x62c] ss:$28 sps:$4 sm:$0xff]   ;;  %v4053_v3 = vld [vmem:[#allocation2 + $0xf4] ss:$28 sps:$4 sm:$0xff]  }
  0xa1   :  { %2764 = vmatpush1.bf16.msra.mxu1 %v3964_v5  ;;  %v4051_v5 = vld [vmem:[#allocation2 + $0xf0] ss:$28 sps:$4 sm:$0xff]  }
  0xa2   :  { %2682 = vmatpush1.bf16.msra.mxu0 %v3961_v4  ;;  %2765 = vmatprep.subr.bf16.mxu1 %v3972_v9  ;;  %v4048_v4 = vld [vmem:[#allocation2 + $0x628] ss:$28 sps:$4 sm:$0xff]  }
  0xa3   :  { %2683 = vmatprep.subr.bf16.mxu0 %v3969_v8  ;;  %v4056_v8 = vld [vmem:[#allocation2 + $0x664] ss:$28 sps:$4 sm:$0xff]   ;;  %v4059_v9 = vld [vmem:[#allocation2 + $0x12c] ss:$28 sps:$4 sm:$0xff]  }
  0xa5   :  { %2766 = vmatpush1.bf16.msra.mxu1 %v3970_v11  ;;  %v4057_v11 = vld [vmem:[#allocation2 + $0x128] ss:$28 sps:$4 sm:$0xff]  }
  0xa6   :  { %2684 = vmatpush1.bf16.msra.mxu0 %v3967_v10  ;;  %2776 = vmatprep.subr.bf16.mxu1 %v3979_v13  ;;  %v4054_v10 = vld [vmem:[#allocation2 + $0x660] ss:$28 sps:$4 sm:$0xff]  }
  0xa7   :  { %2694 = vmatprep.subr.bf16.mxu0 %v3976_v12  ;;  %v4062_v12 = vld [vmem:[#allocation2 + $0x69c] ss:$28 sps:$4 sm:$0xff]   ;;  %v4065_v13 = vld [vmem:[#allocation2 + $0x164] ss:$28 sps:$4 sm:$0xff]  }
  0xa8   :  { %2768 = vmatmul.mubr.bf16.vlgmr.msra.gmra.mrb[4].mxu1 %v4456_v6 }
  0xa9   :  { %2686 = vmatmul.mubr.bf16.vlgmr.msra.gmra.mrb[0].mxu0 %v4475_v15  ;;  %2777 = vmatpush1.bf16.msra.mxu1 %v3977_v16  ;;  %v4063_v16 = vld [vmem:[#allocation2 + $0x160] ss:$28 sps:$4 sm:$0xff]  }
  0xaa   :  { %2695 = vmatpush1.bf16.msra.mxu0 %v3974_v14  ;;  %2778 = vmatprep.subr.bf16.mxu1 %v3986_v18  ;;  %v4060_v14 = vld [vmem:[#allocation2 + $0x698] ss:$28 sps:$4 sm:$0xff]  }
  0xab   :  { %2696 = vmatprep.subr.bf16.mxu0 %v3983_v17  ;;  %2726 = vmatprep.mubr.bf16.mxu0 %v4397_v23  ;;  %v4068_v17 = vld [vmem:[#allocation2 + $0x6d4] ss:$28 sps:$4 sm:$0xff]   ;;  %v4071_v18 = vld [vmem:[#allocation2 + $0x19c] ss:$28 sps:$4 sm:$0xff]  }
  0xac   :  { %2808 = vmatprep.mubr.bf16.mxu1 %v4452_v51 }
  0xad   :  { %2779 = vmatpush1.bf16.msra.mxu1 %v3984_v20  ;;  %v4069_v20 = vld [vmem:[#allocation2 + $0x198] ss:$28 sps:$4 sm:$0xff]  }
  0xae   :  { %2697 = vmatpush1.bf16.msra.mxu0 %v3981_v19  ;;  %2780 = vmatprep.subr.bf16.mxu1 %v3992_v22  ;;  %v4066_v19 = vld [vmem:[#allocation2 + $0x6d0] ss:$28 sps:$4 sm:$0xff]  }
  0xaf   :  { %2698 = vmatprep.subr.bf16.mxu0 %v3989_v21  ;;  %v4074_v21 = vld [vmem:[#allocation2 + $0x70c] ss:$28 sps:$4 sm:$0xff]   ;;  %v4077_v22 = vld [vmem:[#allocation2 + $0x1d4] ss:$28 sps:$4 sm:$0xff]  }
  0xb1   :  { %2781 = vmatpush1.bf16.msra.mxu1 %v3990_v25  ;;  %v4075_v25 = vld [vmem:[#allocation2 + $0x1d0] ss:$28 sps:$4 sm:$0xff]  }
  0xb2   :  { %2699 = vmatpush1.bf16.msra.mxu0 %v3987_v24  ;;  %2782 = vmatprep.subr.bf16.mxu1 %v3998_v27  ;;  %v4072_v24 = vld [vmem:[#allocation2 + $0x708] ss:$28 sps:$4 sm:$0xff]  }
  0xb3   :  { %2700 = vmatprep.subr.bf16.mxu0 %v3995_v26  ;;  %v4080_v26 = vld [vmem:[#allocation2 + $0x744] ss:$28 sps:$4 sm:$0xff]   ;;  %v4083_v27 = vld [vmem:[#allocation2 + $0x20c] ss:$28 sps:$4 sm:$0xff]  }
  0xb5   :  { %2783 = vmatpush1.bf16.msra.mxu1 %v3996_v29  ;;  %v4081_v29 = vld [vmem:[#allocation2 + $0x208] ss:$28 sps:$4 sm:$0xff]  }
  0xb6   :  { %2701 = vmatpush1.bf16.msra.mxu0 %v3993_v28  ;;  %2784 = vmatprep.subr.bf16.mxu1 %v4004_v31  ;;  %v4078_v28 = vld [vmem:[#allocation2 + $0x740] ss:$28 sps:$4 sm:$0xff]  }
  0xb7   :  { %2702 = vmatprep.subr.bf16.mxu0 %v4001_v30  ;;  %v4086_v30 = vld [vmem:[#allocation2 + $0x77c] ss:$28 sps:$4 sm:$0xff]   ;;  %v4089_v31 = vld [vmem:[#allocation2 + $0x244] ss:$28 sps:$4 sm:$0xff]  }
  0xb9   :  { %2785 = vmatpush1.bf16.msra.mxu1 %v4002_v33  ;;  %v4087_v33 = vld [vmem:[#allocation2 + $0x240] ss:$28 sps:$4 sm:$0xff]  }
  0xba   :  { %2703 = vmatpush1.bf16.msra.mxu0 %v3999_v32  ;;  %2786 = vmatprep.subr.bf16.mxu1 %v4010_v36  ;;  %v4084_v32 = vld [vmem:[#allocation2 + $0x778] ss:$28 sps:$4 sm:$0xff]  }
  0xbb   :  { %2704 = vmatprep.subr.bf16.mxu0 %v4007_v35  ;;  %v4092_v35 = vld [vmem:[#allocation2 + $0x7b4] ss:$28 sps:$4 sm:$0xff]   ;;  %v4095_v36 = vld [vmem:[#allocation2 + $0x27c] ss:$28 sps:$4 sm:$0xff]  }
  0xbd   :  { %2787 = vmatpush1.bf16.msra.mxu1 %v4008_v38  ;;  %v4093_v38 = vld [vmem:[#allocation2 + $0x278] ss:$28 sps:$4 sm:$0xff]  }
  0xbe   :  { %2705 = vmatpush1.bf16.msra.mxu0 %v4005_v37  ;;  %2788 = vmatprep.subr.bf16.mxu1 %v4016_v40  ;;  %v4090_v37 = vld [vmem:[#allocation2 + $0x7b0] ss:$28 sps:$4 sm:$0xff]  }
  0xbf   :  { %2706 = vmatprep.subr.bf16.mxu0 %v4013_v39  ;;  %v4098_v39 = vld [vmem:[#allocation2 + $0x7ec] ss:$28 sps:$4 sm:$0xff]   ;;  %v4101_v40 = vld [vmem:[#allocation2 + $0x2b4] ss:$28 sps:$4 sm:$0xff]  }
  0xc1   :  { %2789 = vmatpush1.bf16.msra.mxu1 %v4014_v42  ;;  %v4099_v42 = vld [vmem:[#allocation2 + $0x2b0] ss:$28 sps:$4 sm:$0xff]  }
  0xc2   :  { %2707 = vmatpush1.bf16.msra.mxu0 %v4011_v41  ;;  %2790 = vmatprep.subr.bf16.mxu1 %v4022_v44  ;;  %v4096_v41 = vld [vmem:[#allocation2 + $0x7e8] ss:$28 sps:$4 sm:$0xff]  }
  0xc3   :  { %2708 = vmatprep.subr.bf16.mxu0 %v4019_v43  ;;  %v4104_v43 = vld [vmem:[#allocation2 + $0x824] ss:$28 sps:$4 sm:$0xff]   ;;  %v4107_v44 = vld [vmem:[#allocation2 + $0x2ec] ss:$28 sps:$4 sm:$0xff]  }
  0xc5   :  { %2791 = vmatpush1.bf16.msra.mxu1 %v4020_v46  ;;  %v4105_v46 = vld [vmem:[#allocation2 + $0x2e8] ss:$28 sps:$4 sm:$0xff]  }
  0xc6   :  { %2709 = vmatpush1.bf16.msra.mxu0 %v4017_v45  ;;  %2792 = vmatprep.subr.bf16.mxu1 %v4026_v48  ;;  %v4102_v45 = vld [vmem:[#allocation2 + $0x820] ss:$28 sps:$4 sm:$0xff]  }
  0xc7   :  { %2899 = vmatprep.subr.bf16.mxu0 %v4029_v49  ;;  %v4110_v48 = vld [vmem:[#allocation2 + $0x85c] ss:$28 sps:$4 sm:$0xff]   ;;  %v4113_v49 = vld [vmem:[#allocation2 + $0x324] ss:$28 sps:$4 sm:$0xff]  }
  0xc9   :  { %2727 = vmatmul.mubr.bf16.vlgmr.msra.gmra.mrb[0].mxu0 %v4484_v50  ;;  %2793 = vmatpush1.bf16.msra.mxu1 %v4024_v52  ;;  %v4108_v52 = vld [vmem:[#allocation2 + $0x858] ss:$28 sps:$4 sm:$0xff]  }
  0xca   :  { %2900 = vmatpush1.bf16.msra.mxu0 %v4027_v53  ;;  %2794 = vmatprep.subr.bf16.mxu1 %v4032_v54  ;;  %v4111_v53 = vld [vmem:[#allocation2 + $0x320] ss:$28 sps:$4 sm:$0xff]   ;;  %v4116_v54 = vld [vmem:[#allocation2 + $0x894] ss:$28 sps:$4 sm:$0xff]  }
  0xcb   :  { %2901 = vmatprep.subr.bf16.mxu0 %v4035_v55  ;;  %2931 = vmatprep.mubr.bf16.mxu0 %v4447_v47  ;;  %v4119_v55 = vld [vmem:[#allocation2 + $0x35c] ss:$28 sps:$4 sm:$0xff]  }
  0xcd   :  { %2795 = vmatpush1.bf16.msra.mxu1 %v4030_v56  ;;  %v4114_v56 = vld [vmem:[#allocation2 + $0x890] ss:$28 sps:$4 sm:$0xff]  }
  0xce   :  { %2902 = vmatpush1.bf16.msra.mxu0 %v4033_v57  ;;  %2796 = vmatprep.subr.bf16.mxu1 %v4038_v58  ;;  %v4117_v57 = vld [vmem:[#allocation2 + $0x358] ss:$28 sps:$4 sm:$0xff]   ;;  %v4122_v58 = vld [vmem:[#allocation2 + $0x8cc] ss:$28 sps:$4 sm:$0xff]  }
  0xcf   :  { %2903 = vmatprep.subr.bf16.mxu0 %v4041_v59  ;;  %v4125_v59 = vld [vmem:[#allocation2 + $0x394] ss:$28 sps:$4 sm:$0xff]  }
  0xd1   :  { %2797 = vmatpush1.bf16.msra.mxu1 %v4036_v60  ;;  %v4120_v60 = vld [vmem:[#allocation2 + $0x8c8] ss:$28 sps:$4 sm:$0xff]  }
  0xd2   :  { %2904 = vmatpush1.bf16.msra.mxu0 %v4039_v61  ;;  %2798 = vmatprep.subr.bf16.mxu1 %v4044_v62  ;;  %v4123_v61 = vld [vmem:[#allocation2 + $0x390] ss:$28 sps:$4 sm:$0xff]   ;;  %v4128_v62 = vld [vmem:[#allocation2 + $0x904] ss:$28 sps:$4 sm:$0xff]  }
  0xd3   :  { %2905 = vmatprep.subr.bf16.mxu0 %v4047_v63  ;;  %v4131_v63 = vld [vmem:[#allocation2 + $0x3cc] ss:$28 sps:$4 sm:$0xff]  }
  0xd5   :  { %2799 = vmatpush1.bf16.msra.mxu1 %v4042_v0  ;;  %v4126_v0 = vld [vmem:[#allocation2 + $0x900] ss:$28 sps:$4 sm:$0xff]  }
  0xd6   :  { %2906 = vmatpush1.bf16.msra.mxu0 %v4045_v1  ;;  %2800 = vmatprep.subr.bf16.mxu1 %v4050_v2  ;;  %v4129_v1 = vld [vmem:[#allocation2 + $0x3c8] ss:$28 sps:$4 sm:$0xff]   ;;  %v4134_v2 = vld [vmem:[#allocation2 + $0x93c] ss:$28 sps:$4 sm:$0xff]  }
  0xd7   :  { %2907 = vmatprep.subr.bf16.mxu0 %v4053_v3  ;;  %v4137_v3 = vld [vmem:[#allocation2 + $0x404] ss:$28 sps:$4 sm:$0xff]  }
  0xd9   :  { %2801 = vmatpush1.bf16.msra.mxu1 %v4048_v4  ;;  %v4132_v4 = vld [vmem:[#allocation2 + $0x938] ss:$28 sps:$4 sm:$0xff]  }
  0xda   :  { %2908 = vmatpush1.bf16.msra.mxu0 %v4051_v5  ;;  %2802 = vmatprep.subr.bf16.mxu1 %v4056_v8  ;;  %v4135_v5 = vld [vmem:[#allocation2 + $0x400] ss:$28 sps:$4 sm:$0xff]   ;;  %v4140_v8 = vld [vmem:[#allocation2 + $0x974] ss:$28 sps:$4 sm:$0xff]  }
  0xdb   :  { %2909 = vmatprep.subr.bf16.mxu0 %v4059_v9  ;;  %v4143_v9 = vld [vmem:[#allocation2 + $0x43c] ss:$28 sps:$4 sm:$0xff]  }
  0xdd   :  { %2803 = vmatpush1.bf16.msra.mxu1 %v4054_v10  ;;  %v4138_v10 = vld [vmem:[#allocation2 + $0x970] ss:$28 sps:$4 sm:$0xff]  }
  0xde   :  { %2910 = vmatpush1.bf16.msra.mxu0 %v4057_v11  ;;  %2804 = vmatprep.subr.bf16.mxu1 %v4062_v12  ;;  %v4141_v11 = vld [vmem:[#allocation2 + $0x438] ss:$28 sps:$4 sm:$0xff]   ;;  %v4146_v12 = vld [vmem:[#allocation2 + $0x9ac] ss:$28 sps:$4 sm:$0xff]  }
  0xdf   :  { %2911 = vmatprep.subr.bf16.mxu0 %v4065_v13  ;;  %v4149_v13 = vld [vmem:[#allocation2 + $0x474] ss:$28 sps:$4 sm:$0xff]  }
  0xe1   :  { %2805 = vmatpush1.bf16.msra.mxu1 %v4060_v14  ;;  %v4144_v14 = vld [vmem:[#allocation2 + $0x9a8] ss:$28 sps:$4 sm:$0xff]  }
  0xe2   :  { %2912 = vmatpush1.bf16.msra.mxu0 %v4063_v16  ;;  %2806 = vmatprep.subr.bf16.mxu1 %v4068_v17  ;;  %v4147_v16 = vld [vmem:[#allocation2 + $0x470] ss:$28 sps:$4 sm:$0xff]   ;;  %v4152_v17 = vld [vmem:[#allocation2 + $0x9e4] ss:$28 sps:$4 sm:$0xff]  }
  0xe3   :  { %2913 = vmatprep.subr.bf16.mxu0 %v4071_v18  ;;  %v4155_v18 = vld [vmem:[#allocation2 + $0x4ac] ss:$28 sps:$4 sm:$0xff]  }
  0xe5   :  { %2807 = vmatpush1.bf16.msra.mxu1 %v4066_v19  ;;  %v4150_v19 = vld [vmem:[#allocation2 + $0x9e0] ss:$28 sps:$4 sm:$0xff]  }
  0xe6   :  { %2914 = vmatpush1.bf16.msra.mxu0 %v4069_v20  ;;  %2817 = vmatprep.subr.bf16.mxu1 %v4074_v21  ;;  %v4153_v20 = vld [vmem:[#allocation2 + $0x4a8] ss:$28 sps:$4 sm:$0xff]   ;;  %v4158_v21 = vld [vmem:[#allocation2 + $0xa1c] ss:$28 sps:$4 sm:$0xff]  }
  0xe7   :  { %2915 = vmatprep.subr.bf16.mxu0 %v4077_v22  ;;  %v4161_v22 = vld [vmem:[#allocation2 + $0x4e4] ss:$28 sps:$4 sm:$0xff]  }
  0xe8   :  { %2809 = vmatmul.mubr.bf16.vlgmr.msra.gmra.mrb[4].mxu1 %v4458_v7 }
  0xe9   :  { %2818 = vmatpush1.bf16.msra.mxu1 %v4072_v24  ;;  %2849 = vmatprep.mubr.bf16.mxu1 %v4470_v34  ;;  %v4156_v24 = vld [vmem:[#allocation2 + $0xa18] ss:$28 sps:$4 sm:$0xff]  }
  0xea   :  { %2916 = vmatpush1.bf16.msra.mxu0 %v4075_v25  ;;  %2819 = vmatprep.subr.bf16.mxu1 %v4080_v26  ;;  %v4159_v25 = vld [vmem:[#allocation2 + $0x4e0] ss:$28 sps:$4 sm:$0xff]   ;;  %v4164_v26 = vld [vmem:[#allocation2 + $0xa54] ss:$28 sps:$4 sm:$0xff]  }
  0xeb   :  { %2917 = vmatprep.subr.bf16.mxu0 %v4083_v27  ;;  %v4167_v27 = vld [vmem:[#allocation2 + $0x51c] ss:$28 sps:$4 sm:$0xff]  }
  0xed   :  { %2820 = vmatpush1.bf16.msra.mxu1 %v4078_v28  ;;  %v4162_v28 = vld [vmem:[#allocation2 + $0xa50] ss:$28 sps:$4 sm:$0xff]  }
  0xee   :  { %2918 = vmatpush1.bf16.msra.mxu0 %v4081_v29  ;;  %2821 = vmatprep.subr.bf16.mxu1 %v4086_v30  ;;  %v4165_v29 = vld [vmem:[#allocation2 + $0x518] ss:$28 sps:$4 sm:$0xff]   ;;  %v4170_v30 = vld [vmem:[#allocation2 + $0xa8c] ss:$28 sps:$4 sm:$0xff]  }
  0xef   :  { %2919 = vmatprep.subr.bf16.mxu0 %v4089_v31  ;;  %v4173_v31 = vld [vmem:[#allocation2 + $0x554] ss:$28 sps:$4 sm:$0xff]  }
  0xf1   :  { %2822 = vmatpush1.bf16.msra.mxu1 %v4084_v32  ;;  %v4168_v32 = vld [vmem:[#allocation2 + $0xa88] ss:$28 sps:$4 sm:$0xff]  }
  0xf2   :  { %2920 = vmatpush1.bf16.msra.mxu0 %v4087_v33  ;;  %2823 = vmatprep.subr.bf16.mxu1 %v4092_v35  ;;  %v4171_v33 = vld [vmem:[#allocation2 + $0x550] ss:$28 sps:$4 sm:$0xff]   ;;  %v4176_v35 = vld [vmem:[#allocation2 + $0xac4] ss:$28 sps:$4 sm:$0xff]  }
  0xf3   :  { %2921 = vmatprep.subr.bf16.mxu0 %v4095_v36  ;;  %v4179_v36 = vld [vmem:[#allocation2 + $0x58c] ss:$28 sps:$4 sm:$0xff]  }
  0xf5   :  { %2824 = vmatpush1.bf16.msra.mxu1 %v4090_v37  ;;  %v4174_v37 = vld [vmem:[#allocation2 + $0xac0] ss:$28 sps:$4 sm:$0xff]  }
  0xf6   :  { %2922 = vmatpush1.bf16.msra.mxu0 %v4093_v38  ;;  %2825 = vmatprep.subr.bf16.mxu1 %v4098_v39  ;;  %v4177_v38 = vld [vmem:[#allocation2 + $0x588] ss:$28 sps:$4 sm:$0xff]   ;;  %v4182_v39 = vld [vmem:[#allocation2 + $0xafc] ss:$28 sps:$4 sm:$0xff]  }
  0xf7   :  { %2923 = vmatprep.subr.bf16.mxu0 %v4101_v40  ;;  %v4185_v40 = vld [vmem:[#allocation2 + $0x5c4] ss:$28 sps:$4 sm:$0xff]  }
  0xf9   :  { %2826 = vmatpush1.bf16.msra.mxu1 %v4096_v41  ;;  %v4180_v41 = vld [vmem:[#allocation2 + $0xaf8] ss:$28 sps:$4 sm:$0xff]  }
  0xfa   :  { %2924 = vmatpush1.bf16.msra.mxu0 %v4099_v42  ;;  %2827 = vmatprep.subr.bf16.mxu1 %v4104_v43  ;;  %v4183_v42 = vld [vmem:[#allocation2 + $0x5c0] ss:$28 sps:$4 sm:$0xff]   ;;  %v4188_v43 = vld [vmem:[#allocation2 + $0xb34] ss:$28 sps:$4 sm:$0xff]  }
  0xfb   :  { %2925 = vmatprep.subr.bf16.mxu0 %v4107_v44  ;;  %v4191_v44 = vld [vmem:[#allocation2 + $0x5fc] ss:$28 sps:$4 sm:$0xff]  }
  0xfd   :  { %2828 = vmatpush1.bf16.msra.mxu1 %v4102_v45  ;;  %v4186_v45 = vld [vmem:[#allocation2 + $0xb30] ss:$28 sps:$4 sm:$0xff]  }
  0xfe   :  { %2926 = vmatpush1.bf16.msra.mxu0 %v4105_v46  ;;  %2829 = vmatprep.subr.bf16.mxu1 %v4110_v48  ;;  %v4189_v46 = vld [vmem:[#allocation2 + $0x5f8] ss:$28 sps:$4 sm:$0xff]   ;;  %v4194_v48 = vld [vmem:[#allocation2 + $0xb6c] ss:$28 sps:$4 sm:$0xff]  }
  0xff   :  { %2927 = vmatprep.subr.bf16.mxu0 %v4113_v49  ;;  %v4197_v49 = vld [vmem:[#allocation2 + $0x634] ss:$28 sps:$4 sm:$0xff]  }
 0x101   :  { %2830 = vmatpush1.bf16.msra.mxu1 %v4108_v52  ;;  %v4192_v52 = vld [vmem:[#allocation2 + $0xb68] ss:$28 sps:$4 sm:$0xff]  }
 0x102   :  { %2928 = vmatpush1.bf16.msra.mxu0 %v4111_v53  ;;  %2831 = vmatprep.subr.bf16.mxu1 %v4116_v54  ;;  %v4195_v53 = vld [vmem:[#allocation2 + $0x630] ss:$28 sps:$4 sm:$0xff]   ;;  %v4200_v54 = vld [vmem:[#allocation2 + $0xba4] ss:$28 sps:$4 sm:$0xff]  }
 0x103   :  { %2929 = vmatprep.subr.bf16.mxu0 %v4119_v55  ;;  %v4203_v55 = vld [vmem:[#allocation2 + $0x66c] ss:$28 sps:$4 sm:$0xff]  }
 0x105   :  { %2832 = vmatpush1.bf16.msra.mxu1 %v4114_v56  ;;  %v4198_v56 = vld [vmem:[#allocation2 + $0xba0] ss:$28 sps:$4 sm:$0xff]  }
 0x106   :  { %2930 = vmatpush1.bf16.msra.mxu0 %v4117_v57  ;;  %2833 = vmatprep.subr.bf16.mxu1 %v4122_v58  ;;  %v4201_v57 = vld [vmem:[#allocation2 + $0x668] ss:$28 sps:$4 sm:$0xff]   ;;  %v4206_v58 = vld [vmem:[#allocation2 + $0xbdc] ss:$28 sps:$4 sm:$0xff]  }
 0x107   :  { %2940 = vmatprep.subr.bf16.mxu0 %v4125_v59  ;;  %v4209_v59 = vld [vmem:[#allocation2 + $0x6a4] ss:$28 sps:$4 sm:$0xff]  }
 0x109   :  { %2932 = vmatmul.mubr.bf16.vlgmr.msra.gmra.mrb[4].mxu0 %v4456_v6  ;;  %2834 = vmatpush1.bf16.msra.mxu1 %v4120_v60 }
 0x10a   :  { %2941 = vmatpush1.bf16.msra.mxu0 %v4123_v61  ;;  %2835 = vmatprep.subr.bf16.mxu1 %v4128_v62  ;;  %v4204_v61 = vld [vmem:[#allocation2 + $0xbd8] ss:$28 sps:$4 sm:$0xff]   ;;  %v4207_v62 = vld [vmem:[#allocation2 + $0x6a0] ss:$28 sps:$4 sm:$0xff]  }
 0x10b   :  { %2942 = vmatprep.subr.bf16.mxu0 %v4131_v63  ;;  %2972 = vmatprep.mubr.bf16.mxu0 %v4452_v51 }
 0x10d   :  { %2836 = vmatpush1.bf16.msra.mxu1 %v4126_v0  ;;  %v4212_v0 = vld [vmem:[#allocation2 + $0xc14] ss:$28 sps:$4 sm:$0xff]  }
 0x10e   :  { %2943 = vmatpush1.bf16.msra.mxu0 %v4129_v1  ;;  %2837 = vmatprep.subr.bf16.mxu1 %v4134_v2  ;;  %v4215_v2 = vld [vmem:[#allocation2 + $0x6dc] ss:$28 sps:$4 sm:$0xff]  }
 0x10f   :  { %2944 = vmatprep.subr.bf16.mxu0 %v4137_v3 }
 0x111   :  { %2838 = vmatpush1.bf16.msra.mxu1 %v4132_v4  ;;  %v4210_v4 = vld [vmem:[#allocation2 + $0xc10] ss:$28 sps:$4 sm:$0xff]  }
 0x112   :  { %2945 = vmatpush1.bf16.msra.mxu0 %v4135_v5  ;;  %2839 = vmatprep.subr.bf16.mxu1 %v4140_v8  ;;  %v4213_v5 = vld [vmem:[#allocation2 + $0x6d8] ss:$28 sps:$4 sm:$0xff]  }
 0x113   :  { %2946 = vmatprep.subr.bf16.mxu0 %v4143_v9  ;;  %v4218_v8 = vld [vmem:[#allocation2 + $0x714] ss:$28 sps:$4 sm:$0xff]  }
 0x114   :  { %v4219_v9 = vld [vmem:[#allocation2 + $0x1d8] ss:$28 sps:$4 sm:$0xff]  }
 0x115   :  { %2840 = vmatpush1.bf16.msra.mxu1 %v4138_v10  ;;  %v4216_v10 = vld [vmem:[#allocation2 + $0x710] ss:$28 sps:$4 sm:$0xff]  }
 0x116   :  { %2947 = vmatpush1.bf16.msra.mxu0 %v4141_v11  ;;  %2841 = vmatprep.subr.bf16.mxu1 %v4146_v12  ;;  %v4220_v11 = vld [vmem:[#allocation2 + $0x18] ss:$28 sps:$4 sm:$0xff]   ;;  %v4223_v12 = vld [vmem:[#allocation2 + $0x74c] ss:$28 sps:$4 sm:$0xff]  }
 0x117   :  { %2948 = vmatprep.subr.bf16.mxu0 %v4149_v13  ;;  %v4224_v13 = vld [vmem:[#allocation2 + $0x210] ss:$28 sps:$4 sm:$0xff]  }
 0x119   :  { %2842 = vmatpush1.bf16.msra.mxu1 %v4144_v14  ;;  %v4221_v14 = vld [vmem:[#allocation2 + $0x748] ss:$28 sps:$4 sm:$0xff]  }
 0x11a   :  { %2949 = vmatpush1.bf16.msra.mxu0 %v4147_v16  ;;  %2843 = vmatprep.subr.bf16.mxu1 %v4152_v17  ;;  %v4225_v16 = vld [vmem:[#allocation2 + $0x50] ss:$28 sps:$4 sm:$0xff]   ;;  %v4228_v17 = vld [vmem:[#allocation2 + $0x784] ss:$28 sps:$4 sm:$0xff]  }
 0x11b   :  { %2950 = vmatprep.subr.bf16.mxu0 %v4155_v18  ;;  %v4229_v18 = vld [vmem:[#allocation2 + $0x248] ss:$28 sps:$4 sm:$0xff]  }
 0x11d   :  { %2844 = vmatpush1.bf16.msra.mxu1 %v4150_v19  ;;  %v4226_v19 = vld [vmem:[#allocation2 + $0x780] ss:$28 sps:$4 sm:$0xff]  }
 0x11e   :  { %2951 = vmatpush1.bf16.msra.mxu0 %v4153_v20  ;;  %2845 = vmatprep.subr.bf16.mxu1 %v4158_v21  ;;  %v4230_v20 = vld [vmem:[#allocation2 + $0x88] ss:$28 sps:$4 sm:$0xff]   ;;  %v4234_v21 = vld [vmem:[#allocation2 + $0x280] ss:$28 sps:$4 sm:$0xff]  }
 0x11f   :  { %2952 = vmatprep.subr.bf16.mxu0 %v4161_v22  ;;  %v4231_v22 = vld [vmem:[#allocation2 + $0x7b8] ss:$28 sps:$4 sm:$0xff]  }
 0x121   :  { %2846 = vmatpush1.bf16.msra.mxu1 %v4156_v24  ;;  %v4235_v24 = vld [vmem:[#allocation2 + $0xc0] ss:$28 sps:$4 sm:$0xff]  }
 0x122   :  { %2953 = vmatpush1.bf16.msra.mxu0 %v4159_v25  ;;  %2847 = vmatprep.subr.bf16.mxu1 %v4164_v26  ;;  %v4238_v25 = vld [vmem:[#allocation2 + $0x7f4] ss:$28 sps:$4 sm:$0xff]  }
 0x123   :  { %2954 = vmatprep.subr.bf16.mxu0 %v4167_v27  ;;  %v4239_v26 = vld [vmem:[#allocation2 + $0x2b8] ss:$28 sps:$4 sm:$0xff]  }
 0x124   :  { %v4240_v27 = vld [vmem:[#allocation2 + $0xf8] ss:$28 sps:$4 sm:$0xff]  }
 0x125   :  { %2848 = vmatpush1.bf16.msra.mxu1 %v4162_v28  ;;  %v4243_v28 = vld [vmem:[#allocation2 + $0x82c] ss:$28 sps:$4 sm:$0xff]  }
 0x126   :  { %2955 = vmatpush1.bf16.msra.mxu0 %v4165_v29  ;;  %2858 = vmatprep.subr.bf16.mxu1 %v4170_v30  ;;  %v4244_v29 = vld [vmem:[#allocation2 + $0x2f0] ss:$28 sps:$4 sm:$0xff]   ;;  %v4241_v30 = vld [vmem:[#allocation2 + $0x828] ss:$28 sps:$4 sm:$0xff]  }
 0x127   :  { %2956 = vmatprep.subr.bf16.mxu0 %v4173_v31  ;;  %v4245_v31 = vld [vmem:[#allocation2 + $0x130] ss:$28 sps:$4 sm:$0xff]  }
 0x128   :  { %2850 = vmatmul.mubr.bf16.vlgmr.msra.gmra.mrb[4].mxu1 %v4475_v15 }
 0x129   :  { %2859 = vmatpush1.bf16.msra.mxu1 %v4168_v32  ;;  %2890 = vmatprep.mubr.bf16.mxu1 %v4397_v23  ;;  %v4248_v32 = vld [vmem:[#allocation2 + $0x864] ss:$28 sps:$4 sm:$0xff]  }
 0x12a   :  { %2957 = vmatpush1.bf16.msra.mxu0 %v4171_v33  ;;  %2860 = vmatprep.subr.bf16.mxu1 %v4176_v35  ;;  %v4249_v33 = vld [vmem:[#allocation2 + $0x328] ss:$28 sps:$4 sm:$0xff]   ;;  %v4246_v35 = vld [vmem:[#allocation2 + $0x860] ss:$28 sps:$4 sm:$0xff]  }
 0x12b   :  { %2958 = vmatprep.subr.bf16.mxu0 %v4179_v36  ;;  %v4250_v36 = vld [vmem:[#allocation2 + $0x168] ss:$28 sps:$4 sm:$0xff]  }
 0x12d   :  { %2861 = vmatpush1.bf16.msra.mxu1 %v4174_v37  ;;  %v4253_v37 = vld [vmem:[#allocation2 + $0x89c] ss:$28 sps:$4 sm:$0xff]  }
 0x12e   :  { %2959 = vmatpush1.bf16.msra.mxu0 %v4177_v38  ;;  %2862 = vmatprep.subr.bf16.mxu1 %v4182_v39  ;;  %v4254_v38 = vld [vmem:[#allocation2 + $0x360] ss:$28 sps:$4 sm:$0xff]   ;;  %v4251_v39 = vld [vmem:[#allocation2 + $0x898] ss:$28 sps:$4 sm:$0xff]  }
 0x12f   :  { %2960 = vmatprep.subr.bf16.mxu0 %v4185_v40  ;;  %v4255_v40 = vld [vmem:[#allocation2 + $0x1a0] ss:$28 sps:$4 sm:$0xff]  }
 0x131   :  { %2863 = vmatpush1.bf16.msra.mxu1 %v4180_v41  ;;  %v4258_v41 = vld [vmem:[#allocation2 + $0x8d4] ss:$28 sps:$4 sm:$0xff]  }
 0x132   :  { %2961 = vmatpush1.bf16.msra.mxu0 %v4183_v42  ;;  %2864 = vmatprep.subr.bf16.mxu1 %v4188_v43  ;;  %v4259_v42 = vld [vmem:[#allocation2 + $0x558] ss:$28 sps:$4 sm:$0xff]   ;;  %v4256_v43 = vld [vmem:[#allocation2 + $0x8d0] ss:$28 sps:$4 sm:$0xff]  }
 0x133   :  { %2962 = vmatprep.subr.bf16.mxu0 %v4191_v44  ;;  %v4260_v44 = vld [vmem:[#allocation2 + $0x398] ss:$28 sps:$4 sm:$0xff]  }
 0x135   :  { %2865 = vmatpush1.bf16.msra.mxu1 %v4186_v45  ;;  %v4263_v45 = vld [vmem:[#allocation2 + $0x90c] ss:$28 sps:$4 sm:$0xff]  }
 0x136   :  { %2963 = vmatpush1.bf16.msra.mxu0 %v4189_v46  ;;  %2866 = vmatprep.subr.bf16.mxu1 %v4194_v48  ;;  %v4264_v46 = vld [vmem:[#allocation2 + $0x590] ss:$28 sps:$4 sm:$0xff]   ;;  %v4261_v48 = vld [vmem:[#allocation2 + $0x908] ss:$28 sps:$4 sm:$0xff]  }
 0x137   :  { %2964 = vmatprep.subr.bf16.mxu0 %v4197_v49  ;;  %v4265_v49 = vld [vmem:[#allocation2 + $0x3d0] ss:$28 sps:$4 sm:$0xff]  }
 0x139   :  { %2867 = vmatpush1.bf16.msra.mxu1 %v4192_v52  ;;  %v4268_v52 = vld [vmem:[#allocation2 + $0x944] ss:$28 sps:$4 sm:$0xff]  }
 0x13a   :  { %2965 = vmatpush1.bf16.msra.mxu0 %v4195_v53  ;;  %2868 = vmatprep.subr.bf16.mxu1 %v4200_v54  ;;  %v4269_v53 = vld [vmem:[#allocation2 + $0x5c8] ss:$28 sps:$4 sm:$0xff]   ;;  %v4266_v54 = vld [vmem:[#allocation2 + $0x940] ss:$28 sps:$4 sm:$0xff]  }
 0x13b   :  { %2966 = vmatprep.subr.bf16.mxu0 %v4203_v55  ;;  %v4494_v60 = vpop.f32.mrb[0].mxu1  ;;  %v4270_v55 = vld [vmem:[#allocation2 + $0x408] ss:$28 sps:$4 sm:$0xff]  }
 0x13c   :  { %v4496_v63 = vpop.f32.mrb[1].mxu1 }
 0x13d   :  { %v2609_v1 = vpop.f32.mrb[2].mxu1  ;;  %2869 = vmatpush1.bf16.msra.mxu1 %v4198_v56  ;;  %v4273_v56 = vld [vmem:[#allocation2 + $0x97c] ss:$28 sps:$4 sm:$0xff]  }
 0x13e   :  { %2967 = vmatpush1.bf16.msra.mxu0 %v4201_v57  ;;  %v2610_v3 = vpop.f32.mrb[3].mxu1  ;;  %2870 = vmatprep.subr.bf16.mxu1 %v4206_v58  ;;  %v4274_v57 = vld [vmem:[#allocation2 + $0x600] ss:$28 sps:$4 sm:$0xff]   ;;  %v4284_v1 = vld [vmem:[#allocation2 + $0x670] ss:$28 sps:$4 sm:$0xff]  }
 0x13f   :  { %2968 = vmatprep.subr.bf16.mxu0 %v4209_v59  ;;  %v4275_v58 = vld [vmem:[#allocation2 + $0x440] ss:$28 sps:$4 sm:$0xff]   ;;  %v4278_v59 = vld [vmem:[#allocation2 + $0x9b4] ss:$28 sps:$4 sm:$0xff]  }
 0x140   :  { %v4285_v3 = vld [vmem:[#allocation2 + $0x4b0] ss:$28 sps:$4 sm:$0xff]  }
 0x141   :  { %2871 = vmatpush1.bf16.msra.mxu1 %v4204_v61  ;;  %v4279_v61 = vld [vmem:[#allocation2 + $0x638] ss:$28 sps:$4 sm:$0xff]  }
 0x142   :  { %2969 = vmatpush1.bf16.msra.mxu0 %v4207_v62  ;;  %2872 = vmatprep.subr.bf16.mxu1 %v4212_v0  ;;  %v4276_v62 = vld [vmem:[#allocation2 + $0x9b0] ss:$28 sps:$4 sm:$0xff]  }
 0x143   :  { %2970 = vmatprep.subr.bf16.mxu0 %v4215_v2  ;;  %v4283_v0 = vld [vmem:[#allocation2 + $0x9ec] ss:$28 sps:$4 sm:$0xff]  }
 0x144   :  { %v4281_v2 = vld [vmem:[#allocation2 + $0x9e8] ss:$28 sps:$4 sm:$0xff]  }
 0x145   :  { %2873 = vmatpush1.bf16.msra.mxu1 %v4210_v4  ;;  %v4288_v4 = vld [vmem:[#allocation2 + $0xa24] ss:$28 sps:$4 sm:$0xff]  }
 0x146   :  { %2971 = vmatpush1.bf16.msra.mxu0 %v4213_v5  ;;  %3635 = vmatprep.subr.bf16.mxu1 %v4219_v9  ;;  %v4289_v5 = vld [vmem:[#allocation2 + $0x6a8] ss:$28 sps:$4 sm:$0xff]  }
 0x147   :  { %2981 = vmatprep.subr.bf16.mxu0 %v4218_v8  ;;  %v4286_v8 = vld [vmem:[#allocation2 + $0xa20] ss:$28 sps:$4 sm:$0xff]   ;;  %v4290_v9 = vld [vmem:[#allocation2 + $0x4e8] ss:$28 sps:$4 sm:$0xff]  }
 0x148   :  { %2891 = vmatmul.mubr.bf16.vlgmr.msra.gmra.mrb[4].mxu1 %v4484_v50  ;;  %v4233_v50 = vld [vmem:[#allocation2 + $0x7bc] ss:$28 sps:$4 sm:$0xff]  }
 0x149   :  { %2973 = vmatmul.mubr.bf16.vlgmr.msra.gmra.mrb[4].mxu0 %v4458_v7  ;;  %3636 = vmatpush3.bf16.msra.mxu1 %v4220_v11  ;;  %v4294_v11 = vld [vmem:[#allocation2 + $0x6e0] ss:$28 sps:$4 sm:$0xff]  }
 0x14a   :  { %2982 = vmatpush1.bf16.msra.mxu0 %v4216_v10  ;;  %3637 = vmatprep.subr.bf16.mxu1 %v4224_v13  ;;  %v4293_v10 = vld [vmem:[#allocation2 + $0xa5c] ss:$28 sps:$4 sm:$0xff]  }
 0x14b   :  { %2983 = vmatprep.subr.bf16.mxu0 %v4223_v12  ;;  %3095 = vmatprep.mubr.bf16.mxu1 %v4447_v47  ;;  %v4236_v47 = vld [vmem:[#allocation2 + $0x7f0] ss:$28 sps:$4 sm:$0xff]   ;;  %v4291_v12 = vld [vmem:[#allocation2 + $0xa58] ss:$28 sps:$4 sm:$0xff]   ;;  %v4295_v13 = vld [vmem:[#allocation2 + $0x520] ss:$28 sps:$4 sm:$0xff]  }
 0x14c   :  { %3013 = vmatprep.mubr.bf16.mxu0 %v4470_v34 }
 0x14d   :  { %3638 = vmatpush3.bf16.msra.mxu1 %v4225_v16  ;;  %v4299_v16 = vld [vmem:[#allocation2 + $0x8d8] ss:$28 sps:$4 sm:$0xff]  }
 0x14e   :  { %2984 = vmatpush1.bf16.msra.mxu0 %v4221_v14  ;;  %3639 = vmatprep.subr.bf16.mxu1 %v4229_v18  ;;  %v4298_v14 = vld [vmem:[#allocation2 + $0xa94] ss:$28 sps:$4 sm:$0xff]  }
 0x14f   :  { %2985 = vmatprep.subr.bf16.mxu0 %v4228_v17  ;;  %v4296_v17 = vld [vmem:[#allocation2 + $0xa90] ss:$28 sps:$4 sm:$0xff]   ;;  %v4300_v18 = vld [vmem:[#allocation2 + $0x718] ss:$28 sps:$4 sm:$0xff]  }
 0x151   :  { %3640 = vmatpush3.bf16.msra.mxu1 %v4230_v20  ;;  %v4304_v20 = vld [vmem:[#allocation2 + $0x910] ss:$28 sps:$4 sm:$0xff]  }
 0x152   :  { %2986 = vmatpush1.bf16.msra.mxu0 %v4226_v19  ;;  %3641 = vmatprep.subr.bf16.mxu1 %v4234_v21  ;;  %v4303_v19 = vld [vmem:[#allocation2 + $0xacc] ss:$28 sps:$4 sm:$0xff]  }
 0x153   :  { %2987 = vmatprep.subr.bf16.mxu0 %v4233_v50  ;;  %v4301_v50 = vld [vmem:[#allocation2 + $0xac8] ss:$28 sps:$4 sm:$0xff]   ;;  %v4305_v21 = vld [vmem:[#allocation2 + $0x750] ss:$28 sps:$4 sm:$0xff]  }
 0x155   :  { %3642 = vmatpush3.bf16.msra.mxu1 %v4235_v24  ;;  %v4308_v24 = vld [vmem:[#allocation2 + $0xb04] ss:$28 sps:$4 sm:$0xff]  }
 0x156   :  { %2988 = vmatpush1.bf16.msra.mxu0 %v4231_v22  ;;  %3643 = vmatprep.subr.bf16.mxu1 %v4239_v26  ;;  %v495_v22 = vlaneseq  ;;  %v4306_v26 = vld [vmem:[#allocation2 + $0xb00] ss:$28 sps:$4 sm:$0xff]  }
 0x157   :  { %2989 = vmatprep.subr.bf16.mxu0 %v4238_v25  ;;  %v4309_v25 = vld [vmem:[#allocation2 + $0x948] ss:$28 sps:$4 sm:$0xff]  }
 0x159   :  { %3644 = vmatpush3.bf16.msra.mxu1 %v4240_v27  ;;  %v4313_v27 = vld [vmem:[#allocation2 + $0xb3c] ss:$28 sps:$4 sm:$0xff]  }
 0x15a   :  { %2990 = vmatpush1.bf16.msra.mxu0 %v4236_v47  ;;  %3645 = vmatprep.subr.bf16.mxu1 %v4244_v29  ;;  %v4310_v47 = vld [vmem:[#allocation2 + $0x788] ss:$28 sps:$4 sm:$0xff]   ;;  %v4311_v29 = vld [vmem:[#allocation2 + $0xb38] ss:$28 sps:$4 sm:$0xff]  }
 0x15b   :  { %2991 = vmatprep.subr.bf16.mxu0 %v4243_v28  ;;  %v4314_v28 = vld [vmem:[#allocation2 + $0x980] ss:$28 sps:$4 sm:$0xff]  }
 0x15d   :  { %3646 = vmatpush3.bf16.msra.mxu1 %v4245_v31 }
 0x15e   :  { %2992 = vmatpush1.bf16.msra.mxu0 %v4241_v30  ;;  %3647 = vmatprep.subr.bf16.mxu1 %v4249_v33  ;;  %v4315_v30 = vld [vmem:[#allocation2 + $0x7c0] ss:$28 sps:$4 sm:$0xff]  }
 0x15f   :  { %2993 = vmatprep.subr.bf16.mxu0 %v4248_v32  ;;  %v4511_v32 = vld [vmem:[#allocation4] sm:$0xff] }
 0x161   :  { %3648 = vmatpush3.bf16.msra.mxu1 %v4250_v36  ;;  %v4320_v36 = vld [vmem:[#allocation2 + $0x7f8] ss:$28 sps:$4 sm:$0xff]  }
 0x162   :  { %2994 = vmatpush1.bf16.msra.mxu0 %v4246_v35  ;;  %3649 = vmatprep.subr.bf16.mxu1 %v4254_v38  ;;  %v4316_v35 = vld [vmem:[#allocation2 + $0xb70] ss:$28 sps:$4 sm:$0xff]  }
 0x163   :  { %2995 = vmatprep.subr.bf16.mxu0 %v4253_v37  ;;  %v4323_v38 = vld [vmem:[#allocation2 + $0xbac] ss:$28 sps:$4 sm:$0xff]  }
 0x165   :  { %3650 = vmatpush3.bf16.msra.mxu1 %v4255_v40 }
 0x166   :  { %2996 = vmatpush1.bf16.msra.mxu0 %v4251_v39  ;;  %3657 = vmatprep.subr.bf16.mxu1 %v4259_v42  ;;  %v4324_v39 = vld [vmem:[#allocation2 + $0x9f0] ss:$28 sps:$4 sm:$0xff]  }
 0x167   :  { %2997 = vmatprep.subr.bf16.mxu0 %v4258_v41  ;;  %v4321_v41 = vld [vmem:[#allocation2 + $0xba8] ss:$28 sps:$4 sm:$0xff]   ;;  %v4325_v42 = vld [vmem:[#allocation2 + $0x830] ss:$28 sps:$4 sm:$0xff]  }
 0x168   :  { %3096 = vmatmul.mubr.bf16.vlgmr.msra.gmra.mrb[8].mxu1 %v4456_v6  ;;  %v4271_v6 = vld [vmem:[#allocation2 + $0x978] ss:$28 sps:$4 sm:$0xff]  }
 0x169   :  { %3658 = vmatpush3.bf16.msra.mxu1 %v4260_v44  ;;  %3135 = vmatprep.mubr.bf16.mxu1 %v4452_v51  ;;  %v4280_v51 = vld [vmem:[#allocation2 + $0x478] ss:$28 sps:$4 sm:$0xff]   ;;  %v4328_v44 = vld [vmem:[#allocation2 + $0xbe4] ss:$28 sps:$4 sm:$0xff]  }
 0x16a   :  { %2998 = vmatpush1.bf16.msra.mxu0 %v4256_v43  ;;  %3659 = vmatprep.subr.bf16.mxu1 %v4264_v46 }
 0x16b   :  { %2999 = vmatprep.subr.bf16.mxu0 %v4263_v45  ;;  %v4329_v45 = vld [vmem:[#allocation2 + $0xa28] ss:$28 sps:$4 sm:$0xff]  }
 0x16d   :  { %3660 = vmatpush3.bf16.msra.mxu1 %v4265_v49 }
 0x16e   :  { %3000 = vmatpush1.bf16.msra.mxu0 %v4261_v48  ;;  %3661 = vmatprep.subr.bf16.mxu1 %v4269_v53 }
 0x16f   :  { %3001 = vmatprep.subr.bf16.mxu0 %v4268_v52 }
 0x171   :  { %3662 = vmatpush3.bf16.msra.mxu1 %v4270_v55  ;;  %v4326_v55 = vld [vmem:[#allocation2 + $0xbe0] ss:$28 sps:$4 sm:$0xff]  }
 0x172   :  { %3002 = vmatpush1.bf16.msra.mxu0 %v4266_v54  ;;  %3663 = vmatprep.subr.bf16.mxu1 %v4274_v57  ;;  %v4333_v57 = vld [vmem:[#allocation2 + $0xc1c] ss:$28 sps:$4 sm:$0xff]  }
 0x173   :  { %3003 = vmatprep.subr.bf16.mxu0 %v4273_v56  ;;  %v4330_v56 = vld [vmem:[#allocation2 + $0x868] ss:$28 sps:$4 sm:$0xff]  }
 0x175   :  { %3664 = vmatpush3.bf16.msra.mxu1 %v4275_v58  ;;  %v4335_v58 = vld [vmem:[#allocation2 + $0x8a0] ss:$28 sps:$4 sm:$0xff]  }
 0x176   :  { %3004 = vmatpush1.bf16.msra.mxu0 %v4271_v6  ;;  %3665 = vmatprep.subr.bf16.mxu1 %v4279_v61  ;;  %v4334_v6 = vld [vmem:[#allocation2 + $0xa60] ss:$28 sps:$4 sm:$0xff]   ;;  %v4398_v61 = vmov 0.0  }
 0x177   :  { %3005 = vmatprep.subr.bf16.mxu0 %v4278_v59  ;;  %v4336_v59 = vld [vmem:[#allocation2 + $0xa98] ss:$28 sps:$4 sm:$0xff]  }
 0x179   :  { %3666 = vmatpush3.bf16.msra.mxu1 %v4280_v51  ;;  %v4337_v51 = vld [vmem:[#allocation2 + $0xad0] ss:$28 sps:$4 sm:$0xff]  }
 0x17a   :  { %3006 = vmatpush1.bf16.msra.mxu0 %v4276_v62  ;;  %3667 = vmatprep.subr.bf16.mxu1 %v4284_v1  ;;  %v4344_v62 = vld [vmem:[%s4553_s0 + $0x18] ss:$0 sps:$4 sm:$0xff]   ;;  %v4339_v1 = vld [vmem:[#allocation2 + $0xb40] ss:$28 sps:$4 sm:$0xff]  }
 0x17b   :  { %3007 = vmatprep.subr.bf16.mxu0 %v4283_v0  ;;  %v4338_v0 = vld [vmem:[#allocation2 + $0xb08] ss:$28 sps:$4 sm:$0xff]  }
 0x17d   :  { %3668 = vmatpush3.bf16.msra.mxu1 %v4285_v3  ;;  %v4341_v3 = vld [vmem:[#allocation2 + $0xbb0] ss:$28 sps:$4 sm:$0xff]  }
 0x17e   :  { %3008 = vmatpush1.bf16.msra.mxu0 %v4281_v2  ;;  %3669 = vmatprep.subr.bf16.mxu1 %v4289_v5  ;;  %v4340_v2 = vld [vmem:[#allocation2 + $0xb78] ss:$28 sps:$4 sm:$0xff]  }
 0x17f   :  { %3009 = vmatprep.subr.bf16.mxu0 %v4288_v4  ;;  %v4342_v4 = vld [vmem:[#allocation2 + $0xbe8] ss:$28 sps:$4 sm:$0xff]  }
 0x181   :  { %3670 = vmatpush3.bf16.msra.mxu1 %v4290_v9 }
 0x182   :  { %3010 = vmatpush1.bf16.msra.mxu0 %v4286_v8  ;;  %3671 = vmatprep.subr.bf16.mxu1 %v4294_v11 }
 0x183   :  { %3011 = vmatprep.subr.bf16.mxu0 %v4293_v10 }
 0x185   :  { %3672 = vmatpush3.bf16.msra.mxu1 %v4295_v13 }
 0x186   :  { %3012 = vmatpush1.bf16.msra.mxu0 %v4291_v12  ;;  %3679 = vmatprep.subr.bf16.mxu1 %v4299_v16 }
 0x187   :  { %3022 = vmatprep.subr.bf16.mxu0 %v4298_v14 }
 0x188   :  { %3136 = vmatmul.mubr.bf16.vlgmr.msra.gmra.mrb[12].mxu1 %v4458_v7  ;;  %v4508_v7 = vshrl.u32 %v495_v22, 7 }
 0x189   :  { %3014 = vmatmul.mubr.bf16.vlgmr.msra.gmra.mrb[4].mxu0 %v4475_v15  ;;  %3680 = vmatpush3.bf16.msra.mxu1 %v4300_v18 }
 0x18a   :  { %3023 = vmatpush1.bf16.msra.mxu0 %v4296_v17  ;;  %3681 = vmatprep.subr.bf16.mxu1 %v4304_v20  ;;  %v497_v31 = vsub.s32 0, %v4508_v7  ;;  %v501_v33 = vsub.s32 1, %v4508_v7  ;;  %v505_v5 = vsub.s32 2, %v4508_v7  ;;  %v509_v8 = vsub.s32 3, %v4508_v7 }
 0x18b   :  { %3024 = vmatprep.subr.bf16.mxu0 %v4303_v19  ;;  %3054 = vmatprep.mubr.bf16.mxu0 %v4397_v23  ;;  %v4318_v23 = vld [vmem:[#allocation2 + $0xb74] ss:$28 sps:$4 sm:$0xff]   ;;  %v521_v22 = vsub.s32 6, %v4508_v7 }
 0x18c   :  { %3175 = vmatprep.mubr.bf16.mxu1 %v4470_v34  ;;  %v4319_v34 = vld [vmem:[#allocation2 + $0x9b8] ss:$28 sps:$4 sm:$0xff]   ;;  %v498_v37 = vrot.slane %v4511_v32, %v497_v31  ;;  %v502_v40 = vrot.slane %v4511_v32, %v501_v33  ;;  %v506_v9 = vrot.slane %v4511_v32, %v505_v5  ;;  %v510_v10 = vrot.slane %v4511_v32, %v509_v8 }
 0x18d   :  { %3682 = vmatpush3.bf16.msra.mxu1 %v4305_v21  ;;  %v513_v31 = vsub.s32 4, %v4508_v7 }
 0x18e   :  { %3025 = vmatpush1.bf16.msra.mxu0 %v4301_v50  ;;  %3683 = vmatprep.subr.bf16.mxu1 %v4309_v25  ;;  %v2606_v43 = vadd.f32 %v4494_v60, %v498_v37  ;;  %v2608_v46 = vadd.f32 %v4496_v63, %v502_v40  ;;  %v4331_v63 = vld [vmem:[#allocation2 + $0xc18] ss:$28 sps:$4 sm:$0xff]  }
 0x18f   :  { %3026 = vmatprep.subr.bf16.mxu0 %v4308_v24  ;;  %v522_v24 = vrot.slane %v4511_v32, %v521_v22 }
 0x191   :  { %3684 = vmatpush3.bf16.msra.mxu1 %v4310_v47 }
 0x192   :  { %3027 = vmatpush1.bf16.msra.mxu0 %v4306_v26  ;;  %3685 = vmatprep.subr.bf16.mxu1 %v4314_v28 }
 0x193   :  { %3028 = vmatprep.subr.bf16.mxu0 %v4313_v27 }
 0x195   :  { %3686 = vmatpush3.bf16.msra.mxu1 %v4315_v30 }
 0x196   :  { %3029 = vmatpush1.bf16.msra.mxu0 %v4311_v29  ;;  %3687 = vmatprep.subr.bf16.mxu1 %v4319_v34  ;;  %v514_v34 = vrot.slane %v4511_v32, %v513_v31 }
 0x197   :  { %3030 = vmatprep.subr.bf16.mxu0 %v4318_v23  ;;  %v517_v23 = vsub.s32 5, %v4508_v7 }
 0x199   :  { %3688 = vmatpush3.bf16.msra.mxu1 %v4320_v36  ;;  %v518_v33 = vrot.slane %v4511_v32, %v517_v23 }
 0x19a   :  { %3031 = vmatpush1.bf16.msra.mxu0 %v4316_v35  ;;  %3689 = vmatprep.subr.bf16.mxu1 %v4324_v39 }
 0x19b   :  { %3032 = vmatprep.subr.bf16.mxu0 %v4323_v38 }
 0x19c   :  { %v2728_v48 = vpop.f32.mrb[0].mxu0 }
 0x19d   :  { %v3731_v49 = vadd.f32 %v2728_v48, %v2606_v43  ;;  %v2730_v52 = vpop.f32.mrb[1].mxu0  ;;  %3690 = vmatpush3.bf16.msra.mxu1 %v4325_v42 }
 0x19e   :  { %v3733_v53 = vadd.f32 %v2730_v52, %v2608_v46  ;;  %v2732_v54 = vpop.f32.mrb[2].mxu0  ;;  %3033 = vmatpush1.bf16.msra.mxu0 %v4321_v41  ;;  %3691 = vmatprep.subr.bf16.mxu1 %v4329_v45 }
 0x19f   :  { %3223 = vst [vmem:[%s4556_s3] sm:$0xff] %v3731_v49  ;;  %v2733_v60 = vpop.f32.mrb[3].mxu0  ;;  %3034 = vmatprep.subr.bf16.mxu0 %v4328_v44 }
 0x1a0   :  { %3224 = vst [vmem:[%s4556_s3 + $0x8] sm:$0xff] %v3733_v53 }
 0x1a1   :  { %3692 = vmatpush3.bf16.msra.mxu1 %v4330_v56 }
 0x1a2   :  { %3035 = vmatpush1.bf16.msra.mxu0 %v4326_v55  ;;  %3693 = vmatprep.subr.bf16.mxu1 %v4334_v6 }
 0x1a3   :  { %3036 = vmatprep.subr.bf16.mxu0 %v4333_v57 }
 0x1a5   :  { %3694 = vmatpush3.bf16.msra.mxu1 %v4335_v58 }
 0x1a6   :  { %3037 = vmatpush1.bf16.msra.mxu0 %v4331_v63  ;;  %3710 = vmatprep.subr.bf16.mxu1 %v4398_v61 }
 0x1a8   :  { %3176 = vmatmul.mubr.bf16.vlgmr.msra.gmra.mrb[16].mxu1 %v4475_v15  ;;  %v4343_v15 = vld [vmem:[#allocation2 + $0xc20] ss:$28 sps:$4 sm:$0xff]  }
 0x1a9   :  { %3055 = vmatmul.mubr.bf16.vlgmr.msra.gmra.mrb[4].mxu0 %v4344_v62  ;;  %3711 = vmatpush3.bf16.msra.mxu1 %v4336_v59 }
 0x1aa   :  { %3726 = vmatprep.mubr.msk.bf16.mxu1 %vm4399_vm0, %v4398_v61  ;;  %3712 = vmatprep.subr.bf16.mxu1 %v4398_v61 }
 0x1ad   :  { %3713 = vmatpush3.bf16.msra.mxu1 %v4337_v51 }
 0x1ae   :  { %3714 = vmatprep.subr.bf16.mxu1 %v4398_v61 }
 0x1b1   :  { %3715 = vmatpush3.bf16.msra.mxu1 %v4338_v0 }
 0x1b2   :  { %3716 = vmatprep.subr.bf16.mxu1 %v4398_v61 }
 0x1b5   :  { %3717 = vmatpush3.bf16.msra.mxu1 %v4339_v1 }
 0x1b6   :  { %3718 = vmatprep.subr.bf16.mxu1 %v4398_v61 }
 0x1b9   :  { %3719 = vmatpush3.bf16.msra.mxu1 %v4340_v2 }
 0x1ba   :  { %3720 = vmatprep.subr.bf16.mxu1 %v4398_v61 }
 0x1bd   :  { %3721 = vmatpush3.bf16.msra.mxu1 %v4341_v3 }
 0x1be   :  { %3722 = vmatprep.subr.bf16.mxu1 %v4398_v61 }
 0x1c1   :  { %3723 = vmatpush3.bf16.msra.mxu1 %v4342_v4 }
 0x1c2   :  { %3724 = vmatprep.subr.bf16.mxu1 %v4398_v61 }
 0x1c5   :  { %3725 = vmatpush3.bf16.msra.mxu1 %v4343_v15 }
 0x1c8   :  { %3727 = vmatmul.mubr.bf16.vlgmr.msra.gmra.mrb[20].mxu1 %v4344_v62 }
 0x21b   :  { %v2892_v11 = vpop.f32.mrb[4].mxu1 }
 0x21c   :  { %v3734_v12 = vadd.f32 %v2892_v11, %v506_v9  ;;  %v2894_v13 = vpop.f32.mrb[5].mxu1 }
 0x21d   :  { %v3735_v14 = vadd.f32 %v2894_v13, %v510_v10  ;;  %v2896_v16 = vpop.f32.mrb[6].mxu1 }
 0x21e   :  { %3225 = vst [vmem:[%s4556_s3 + $0x10] sm:$0xff] %v3734_v12  ;;  %v2897_v17 = vpop.f32.mrb[7].mxu1 }
 0x21f   :  { %3226 = vst [vmem:[%s4556_s3 + $0x18] sm:$0xff] %v3735_v14 }
 0x23b   :  { %v3651_v18 = vpop.f32.mrb[8].mxu1 }
 0x23c   :  { %v3652_v19 = vpop.f32.mrb[9].mxu1 }
 0x23d   :  { %v3653_v20 = vadd.f32 %v3652_v19, %v3651_v18  ;;  %v3654_v50 = vpop.f32.mrb[10].mxu1 }
 0x23e   :  { %v3655_v21 = vpop.f32.mrb[11].mxu1 }
 0x23f   :  { %v3098_v47 = vadd.f32 %v3653_v20, %v522_v24 }
 0x25b   :  { %v3673_v25 = vpop.f32.mrb[12].mxu1 }
 0x25c   :  { %v3674_v26 = vpop.f32.mrb[13].mxu1 }
 0x25d   :  { %v3675_v27 = vadd.f32 %v3674_v26, %v3673_v25  ;;  %v3676_v28 = vpop.f32.mrb[14].mxu1 }
 0x25e   :  { %v3677_v29 = vpop.f32.mrb[15].mxu1 }
 0x25f   :  { %v3138_v30 = vadd.f32 %v3675_v27, %v3098_v47 }
 0x27b   :  { %v3695_v36 = vpop.f32.mrb[16].mxu1 }
 0x27c   :  { %v3056_v35 = vpop.f32.mrb[4].mxu0  ;;  %v3696_v39 = vpop.f32.mrb[17].mxu1 }
 0x27d   :  { %v3736_v37 = vadd.f32 %v3056_v35, %v514_v34  ;;  %v3058_v38 = vpop.f32.mrb[5].mxu0  ;;  %v3697_v41 = vadd.f32 %v3696_v39, %v3695_v36  ;;  %v3698_v43 = vpop.f32.mrb[18].mxu1 }
 0x27e   :  { %v3737_v40 = vadd.f32 %v3058_v38, %v518_v33  ;;  %v3060_v42 = vpop.f32.mrb[6].mxu0  ;;  %v3699_v45 = vpop.f32.mrb[19].mxu1 }
 0x27f   :  { %3227 = vst [vmem:[%s4556_s3 + $0x20] sm:$0xff] %v3736_v37  ;;  %v3061_v44 = vpop.f32.mrb[7].mxu0  ;;  %v3178_v7 = vadd.f32 %v3697_v41, %v3138_v30 }
 0x280   :  { %3228 = vst [vmem:[%s4556_s3 + $0x28] sm:$0xff] %v3737_v40 }
 0x29b   :  { %v3217_v32 = vpop.f32.mrb[20].mxu1 }
 0x29c   :  { %v3218_v46 = vadd.f32 %v3217_v32, %v3178_v7  ;;  %v3728_v48 = vpop.f32.mrb[21].mxu1 }
 0x29d   :  { %v3220_v49 = vpop.f32.mrb[22].mxu1 }
 0x29e   :  { %3229 = vst [vmem:[%s4556_s3 + $0x30] sm:$0xff] %v3218_v46  ;;  %v3729_v52 = vpop.f32.mrb[23].mxu1 }
 0x29f   :  { %3234 = vsyncpa [#allocation3], 1 }
 0x2a0   :  { %3235 = vsyncpa [#allocation5], 1 }

</bundles_post_ra>
